<compile_context>
chip_gen: v7x
topology: tpu7x:2x2x1
jax: 0.10.0
libtpu: 0.0.40
codegen_flags: <defaults>
</compile_context>

<pallas_src>
import functools

import jax
import jax.numpy as jnp
from jax.experimental import pallas as pl
from jax.experimental.pallas import tpu as pltpu


def _vae_prior_kernel(latent_dim,
                      x_ref, mask_ref,
                      w_ml_ref, b_ml_ref, w_out_ref, b_out_ref, eps_ref,
                      lat_ref, rec_ref,
                      acc_ref, den_ref):
    t = pl.program_id(1)

    @pl.when(t == 0)
    def _init():
        acc_ref[...] = jnp.zeros_like(acc_ref)
        den_ref[...] = jnp.zeros_like(den_ref)

    # ---- masked sum over this T tile (f32 accumulation of bf16 tiles) ------
    x = x_ref[...].astype(jnp.float32)      # (T_t, B_t, C)
    m = mask_ref[...]                        # (T_t, B_t, 1) f32 in {0,1}

    # lane-broadcast multiply + accumulate over the leading T axis:
    # VPU-only work on the dominant tensor, no cross-lane reduce.
    acc_ref[...] += jnp.sum(x * m, axis=0)   # (B_t, C)
    den_ref[...] += jnp.sum(m, axis=0)       # (B_t, 1)

    # ---- finalize on the last T tile: projections + reparameterization -----
    @pl.when(t == pl.num_programs(1) - 1)
    def _finalize():
        den = jnp.maximum(den_ref[...], 1.0)                    # all-pad guard
        h_f = acc_ref[...] * pl.reciprocal(den, approx=False)   # (B_t, C)

        # fused mean|logv projection: one (C, 2L) matmul instead of two.
        # (weights kept f32 to match module numerics; cast operands to bf16
        #  here for full MXU rate once C/L grow large.)
        ml = jnp.dot(h_f, w_ml_ref[...],
                     preferred_element_type=jnp.float32) + b_ml_ref[...]
        mean = ml[:, :latent_dim]
        logv = ml[:, latent_dim:]
        z = mean + eps_ref[...] * jnp.exp(0.5 * logv)
        rec = jnp.dot(z, w_out_ref[...],
                      preferred_element_type=jnp.float32) + b_out_ref[...]

        # single lane-dense latent output slab [mean | logv | z].
        lat_ref[...] = jnp.concatenate([mean, logv, z], axis=-1)
        rec_ref[...] = rec


def vae_prior_forward(inputs_tbc, params, eps, mask=None, *, t_tile=128):
    """inputs_tbc: (T, B, C) encoder output (kept in its native layout/dtype);
    mask: (B, T) with 1 = keep, or None (-> plain mean over T)."""
    T, B, C = inputs_tbc.shape
    L = params["w_ml"].shape[1] // 2

    if mask is None:
        mask_bt = jnp.ones((B, T), dtype=jnp.float32)
    else:
        mask_bt = mask.astype(jnp.float32)
    # tiny (B*T) tensor: reshaping it in plain JAX is negligible and lets the
    # kernel do a pure lane-broadcast multiply against the (T, B, C) tiles.
    mask_tb1 = mask_bt.T[:, :, None]          # (T, B, 1)

    # ---- tiling -------------------------------------------------------------
    # T tile must be a multiple of 128 (lane constraint via the x block's C
    # and general alignment) or the full T; keep 2 double-buffered x tiles
    # well under the scoped-VMEM default (~32 MiB; v7x has 64 MiB per TC).
    if T % 128 != 0:
        t_tile = T
    else:
        t_tile = min(t_tile, T)
        x_bytes_per_t = B * C * inputs_tbc.dtype.itemsize
        while t_tile > 128 and 2 * t_tile * x_bytes_per_t > (8 << 20):
            t_tile //= 2
        while T % t_tile != 0:
            t_tile //= 2
    b_tile = B   # TODO(synk): tile B by multiples of 8 for very large batches.
    nb, nt = B // b_tile, T // t_tile

    out_shapes = (
        jax.ShapeDtypeStruct((B, 3 * L), jnp.float32),   # [mean | logv | z]
        jax.ShapeDtypeStruct((B, C), jnp.float32),       # rec
    )

    grid_spec = pltpu.PrefetchScalarGridSpec(
        num_scalar_prefetch=0,
        grid=(nb, nt),
        in_specs=[
            pl.BlockSpec((t_tile, b_tile, C), lambda b, t: (t, b, 0)),   # x
            pl.BlockSpec((t_tile, b_tile, 1), lambda b, t: (t, b, 0)),   # mask
            pl.BlockSpec((C, 2 * L), lambda b, t: (0, 0)),               # w_ml
            pl.BlockSpec((1, 2 * L), lambda b, t: (0, 0)),               # b_ml
            pl.BlockSpec((L, C), lambda b, t: (0, 0)),                   # w_out
            pl.BlockSpec((1, C), lambda b, t: (0, 0)),                   # b_out
            pl.BlockSpec((b_tile, L), lambda b, t: (b, 0)),              # eps
        ],
        out_specs=(
            pl.BlockSpec((b_tile, 3 * L), lambda b, t: (b, 0)),
            pl.BlockSpec((b_tile, C), lambda b, t: (b, 0)),
        ),
        scratch_shapes=[
            pltpu.VMEM((b_tile, C), jnp.float32),   # masked-sum accumulator
            pltpu.VMEM((b_tile, 1), jnp.float32),   # token-count accumulator
        ],
    )

    lat, rec = pl.pallas_call(
        functools.partial(_vae_prior_kernel, L),
        out_shape=out_shapes,
        grid_spec=grid_spec,
        compiler_params=pltpu.CompilerParams(
            dimension_semantics=("parallel", "arbitrary")),
    )(inputs_tbc, mask_tb1,
      params["w_ml"], params["b_ml"], params["w_out"], params["b_out"], eps)

    return {"mean": lat[:, :L], "logv": lat[:, L:2 * L], "z": lat[:, 2 * L:],
            "rec": rec}


def init_params(key, embed_dim, latent_dim):
    ks = jax.random.split(key, 3)
    s_in = 1.0 / jnp.sqrt(jnp.float32(embed_dim))
    s_lat = 1.0 / jnp.sqrt(jnp.float32(latent_dim))
    w_mean = jax.random.normal(ks[0], (embed_dim, latent_dim), jnp.float32) * s_in
    w_logv = jax.random.normal(ks[1], (embed_dim, latent_dim), jnp.float32) * s_in
    return {
        # mean/logv linears packed into one lane-dense (C, 2L) weight.
        "w_ml": jnp.concatenate([w_mean, w_logv], axis=1),
        "b_ml": jnp.zeros((1, 2 * latent_dim), jnp.float32),
        "w_out": jax.random.normal(ks[2], (latent_dim, embed_dim), jnp.float32) * s_lat,
        "b_out": jnp.zeros((1, embed_dim), jnp.float32),
    }


if __name__ == "__main__":
    # seq T=256, batch B=8, encoder_embed_dim C=128, latent_dim L=128
    T, B, C, L = 256, 8, 128, 128
    key = jax.random.PRNGKey(0)
    k_x, k_p, k_eps, k_len = jax.random.split(key, 4)

    # bf16 activations in the fairseq (T, B, C) layout (no wrapper transpose).
    inputs = jax.random.normal(k_x, (T, B, C), jnp.float32).astype(jnp.bfloat16)

    # per-row valid lengths -> padding mask (B, T)
    lengths = jax.random.randint(k_len, (B,), minval=T // 2, maxval=T + 1)
    mask = (jnp.arange(T)[None, :] < lengths[:, None]).astype(jnp.float32)

    params = init_params(k_p, C, L)
    eps = jax.random.normal(k_eps, (B, L), jnp.float32)      # reparam noise

    out = vae_prior_forward(inputs, params, eps, mask=mask)
    jax.block_until_ready(out)

    # ---- pure-JAX reference --------------------------------------------------
    x32 = inputs.astype(jnp.float32)
    x_btc = jnp.transpose(x32, (1, 0, 2))
    den = jnp.sum(mask, axis=1, keepdims=True)
    h_ref = jnp.sum(x_btc * mask[:, :, None], axis=1) / den
    w_mean, w_logv = params["w_ml"][:, :L], params["w_ml"][:, L:]
    b_mean, b_logv = params["b_ml"][:, :L], params["b_ml"][:, L:]
    hp = jax.lax.Precision.HIGHEST
    mean_ref = jnp.dot(h_ref, w_mean, precision=hp) + b_mean
    logv_ref = jnp.dot(h_ref, w_logv, precision=hp) + b_logv
    z_ref = mean_ref + eps * jnp.exp(0.5 * logv_ref)
    rec_ref = jnp.dot(z_ref, params["w_out"], precision=hp) + params["b_out"]

    assert jnp.allclose(out["mean"], mean_ref, atol=1e-3, rtol=1e-3)
    assert jnp.allclose(out["logv"], logv_ref, atol=1e-3, rtol=1e-3)
    assert jnp.allclose(out["z"], z_ref, atol=1e-3, rtol=1e-3)
    assert jnp.allclose(out["rec"], rec_ref, atol=1e-3, rtol=1e-3)

    print("KERNEL_OK")
</pallas_src>

<mosaic_0001>
module attributes {stable_mosaic.version = 11 : i64} {
  func.func @_vae_prior_kernel(%arg0: i32, %arg1: i32, %arg2: memref<128x8x128xbf16, #tpu.memory_space<vmem>>, %arg3: memref<128x8x1xf32, #tpu.memory_space<vmem>>, %arg4: memref<128x256xf32, #tpu.memory_space<vmem>>, %arg5: memref<1x256xf32, #tpu.memory_space<vmem>>, %arg6: memref<128x128xf32, #tpu.memory_space<vmem>>, %arg7: memref<1x128xf32, #tpu.memory_space<vmem>>, %arg8: memref<8x128xf32, #tpu.memory_space<vmem>>, %arg9: memref<8x384xf32, #tpu.memory_space<vmem>>, %arg10: memref<8x128xf32, #tpu.memory_space<vmem>>, %arg11: memref<8x128xf32, #tpu.memory_space<vmem>>, %arg12: memref<8x1xf32, #tpu.memory_space<vmem>>) attributes {dimension_semantics = [#tpu.dimension_semantics<parallel>, #tpu.dimension_semantics<arbitrary>], iteration_bounds = array<i64: 1, 2>, scalar_prefetch = 0 : i64, scratch_operands = 2 : i64, tpu.core_type = #tpu.core_type<tc>, window_params = [{transform_indices = @transform_0, window_bounds = array<i64: 128, 8, 128>}, {transform_indices = @transform_1, window_bounds = array<i64: 128, 8, 1>}, {pipeline_mode = #tpu.pipeline_mode<synchronous>, transform_indices = @transform_2, window_bounds = array<i64: 128, 256>}, {pipeline_mode = #tpu.pipeline_mode<synchronous>, transform_indices = @transform_3, window_bounds = array<i64: 1, 256>}, {pipeline_mode = #tpu.pipeline_mode<synchronous>, transform_indices = @transform_4, window_bounds = array<i64: 128, 128>}, {pipeline_mode = #tpu.pipeline_mode<synchronous>, transform_indices = @transform_5, window_bounds = array<i64: 1, 128>}, {transform_indices = @transform_6, window_bounds = array<i64: 8, 128>}, {transform_indices = @transform_7, window_bounds = array<i64: 8, 384>}, {transform_indices = @transform_8, window_bounds = array<i64: 8, 128>}]} {
    %c0_i32 = arith.constant 0 : i32
    %0 = arith.cmpi eq, %arg1, %c0_i32 : i32
    %1 = arith.extui %0 : i1 to i32
    %c0_i32_0 = arith.constant 0 : i32
    %2 = arith.cmpi ne, %1, %c0_i32_0 : i32
    scf.if %2 {
      %cst_16 = arith.constant 0.000000e+00 : f32
      %19 = vector.broadcast %cst_16 : f32 to vector<8x128xf32>
      %c0_17 = arith.constant 0 : index
      %c0_18 = arith.constant 0 : index
      %20 = vector.load %arg11[%c0_17, %c0_18] : memref<8x128xf32, #tpu.memory_space<vmem>>, vector<8x128xf32>
      tpu.vector_store %arg11[%c0_17, %c0_18], %19 {strides = array<i32>} : memref<8x128xf32, #tpu.memory_space<vmem>>, vector<8x128xf32>,
      %cst_19 = arith.constant 0.000000e+00 : f32
      %21 = vector.broadcast %cst_19 : f32 to vector<8x1xf32>
      %c0_20 = arith.constant 0 : index
      %c0_21 = arith.constant 0 : index
      %22 = vector.load %arg12[%c0_20, %c0_21] : memref<8x1xf32, #tpu.memory_space<vmem>>, vector<8x1xf32>
      tpu.vector_store %arg12[%c0_20, %c0_21], %21 {strides = array<i32>} : memref<8x1xf32, #tpu.memory_space<vmem>>, vector<8x1xf32>,
    } else {
    }
    %c0 = arith.constant 0 : index
    %c0_1 = arith.constant 0 : index
    %c0_2 = arith.constant 0 : index
    %3 = vector.load %arg2[%c0, %c0_1, %c0_2] : memref<128x8x128xbf16, #tpu.memory_space<vmem>>, vector<128x8x128xbf16>
    %4 = arith.extf %3 : vector<128x8x128xbf16> to vector<128x8x128xf32>
    %c0_3 = arith.constant 0 : index
    %c0_4 = arith.constant 0 : index
    %c0_5 = arith.constant 0 : index
    %5 = vector.load %arg3[%c0_3, %c0_4, %c0_5] : memref<128x8x1xf32, #tpu.memory_space<vmem>>, vector<128x8x1xf32>
    %c0_6 = arith.constant 0 : index
    %c0_7 = arith.constant 0 : index
    %6 = vector.load %arg11[%c0_6, %c0_7] : memref<8x128xf32, #tpu.memory_space<vmem>>, vector<8x128xf32>
    %7 = vector.broadcast %5 : vector<128x8x1xf32> to vector<128x8x128xf32>
    %8 = arith.mulf %4, %7 : vector<128x8x128xf32>
    %cst = arith.constant dense<0.000000e+00> : vector<8x128xf32>
    %9 = vector.multi_reduction <add>, %8, %cst [0] : vector<128x8x128xf32> to vector<8x128xf32>
    %10 = arith.addf %6, %9 : vector<8x128xf32>
    %c0_8 = arith.constant 0 : index
    %c0_9 = arith.constant 0 : index
    %11 = vector.load %arg11[%c0_8, %c0_9] : memref<8x128xf32, #tpu.memory_space<vmem>>, vector<8x128xf32>
    tpu.vector_store %arg11[%c0_8, %c0_9], %10 {strides = array<i32>} : memref<8x128xf32, #tpu.memory_space<vmem>>, vector<8x128xf32>,
    %c0_10 = arith.constant 0 : index
    %c0_11 = arith.constant 0 : index
    %12 = vector.load %arg12[%c0_10, %c0_11] : memref<8x1xf32, #tpu.memory_space<vmem>>, vector<8x1xf32>
    %cst_12 = arith.constant dense<0.000000e+00> : vector<8x1xf32>
    %13 = vector.multi_reduction <add>, %5, %cst_12 [0] : vector<128x8x1xf32> to vector<8x1xf32>
    %14 = arith.addf %12, %13 : vector<8x1xf32>
    %c0_13 = arith.constant 0 : index
    %c0_14 = arith.constant 0 : index
    %15 = vector.load %arg12[%c0_13, %c0_14] : memref<8x1xf32, #tpu.memory_space<vmem>>, vector<8x1xf32>
    tpu.vector_store %arg12[%c0_13, %c0_14], %14 {strides = array<i32>} : memref<8x1xf32, #tpu.memory_space<vmem>>, vector<8x1xf32>,
    %c1_i32 = arith.constant 1 : i32
    %16 = arith.cmpi eq, %arg1, %c1_i32 : i32
    %17 = arith.extui %16 : i1 to i32
    %c0_i32_15 = arith.constant 0 : i32
    %18 = arith.cmpi ne, %17, %c0_i32_15 : i32
    scf.if %18 {
      %c0_16 = arith.constant 0 : index
      %c0_17 = arith.constant 0 : index
      %19 = vector.load %arg12[%c0_16, %c0_17] : memref<8x1xf32, #tpu.memory_space<vmem>>, vector<8x1xf32>
      %cst_18 = arith.constant 1.000000e+00 : f32
      %20 = vector.broadcast %cst_18 : f32 to vector<8x1xf32>
      %21 = arith.maximumf %19, %20 : vector<8x1xf32>
      %c0_19 = arith.constant 0 : index
      %c0_20 = arith.constant 0 : index
      %22 = vector.load %arg11[%c0_19, %c0_20] : memref<8x128xf32, #tpu.memory_space<vmem>>, vector<8x128xf32>
      %23 = tpu.reciprocal %21 : vector<8x1xf32> -> vector<8x1xf32>
      %24 = vector.broadcast %23 : vector<8x1xf32> to vector<8x128xf32>
      %25 = arith.mulf %22, %24 : vector<8x128xf32>
      %c0_21 = arith.constant 0 : index
      %c0_22 = arith.constant 0 : index
      %26 = vector.load %arg4[%c0_21, %c0_22] : memref<128x256xf32, #tpu.memory_space<vmem>>, vector<128x256xf32>
      %cst_23 = arith.constant dense<0.000000e+00> : vector<8x256xf32>
      %27 = tpu.matmul %25, %26, %cst_23 {dimension_numbers = #tpu.dot_dimension_numbers<[1], [0], [0], [1], [0, 0, 1, 1], [], []>} : vector<8x128xf32>, vector<128x256xf32>, vector<8x256xf32> -> vector<8x256xf32>
      %c0_24 = arith.constant 0 : index
      %c0_25 = arith.constant 0 : index
      %28 = vector.load %arg5[%c0_24, %c0_25] : memref<1x256xf32, #tpu.memory_space<vmem>>, vector<1x256xf32>
      %29 = vector.broadcast %28 : vector<1x256xf32> to vector<8x256xf32>
      %30 = arith.addf %27, %29 : vector<8x256xf32>
      %31 = vector.extract_strided_slice %30 {offsets = [0, 0], sizes = [8, 128], strides = [1, 1]} : vector<8x256xf32> to vector<8x128xf32>
      %32 = vector.extract_strided_slice %30 {offsets = [0, 128], sizes = [8, 128], strides = [1, 1]} : vector<8x256xf32> to vector<8x128xf32>
      %c0_26 = arith.constant 0 : index
      %c0_27 = arith.constant 0 : index
      %33 = vector.load %arg8[%c0_26, %c0_27] : memref<8x128xf32, #tpu.memory_space<vmem>>, vector<8x128xf32>
      %cst_28 = arith.constant 5.000000e-01 : f32
      %34 = vector.broadcast %cst_28 : f32 to vector<8x128xf32>
      %35 = arith.mulf %34, %32 : vector<8x128xf32>
      %36 = math.exp %35 : vector<8x128xf32>
      %37 = arith.mulf %33, %36 : vector<8x128xf32>
      %38 = arith.addf %31, %37 : vector<8x128xf32>
      %c0_29 = arith.constant 0 : index
      %c0_30 = arith.constant 0 : index
      %39 = vector.load %arg6[%c0_29, %c0_30] : memref<128x128xf32, #tpu.memory_space<vmem>>, vector<128x128xf32>
      %cst_31 = arith.constant dense<0.000000e+00> : vector<8x128xf32>
      %40 = tpu.matmul %38, %39, %cst_31 {dimension_numbers = #tpu.dot_dimension_numbers<[1], [0], [0], [1], [0, 0, 1, 1], [], []>} : vector<8x128xf32>, vector<128x128xf32>, vector<8x128xf32> -> vector<8x128xf32>
      %c0_32 = arith.constant 0 : index
      %c0_33 = arith.constant 0 : index
      %41 = vector.load %arg7[%c0_32, %c0_33] : memref<1x128xf32, #tpu.memory_space<vmem>>, vector<1x128xf32>
      %42 = vector.broadcast %41 : vector<1x128xf32> to vector<8x128xf32>
      %43 = arith.addf %40, %42 : vector<8x128xf32>
      %44 = tpu.concatenate %31, %32, %38 in 1 : vector<8x128xf32>, vector<8x128xf32>, vector<8x128xf32> -> vector<8x384xf32>
      %c0_34 = arith.constant 0 : index
      %c0_35 = arith.constant 0 : index
      %45 = vector.load %arg9[%c0_34, %c0_35] : memref<8x384xf32, #tpu.memory_space<vmem>>, vector<8x384xf32>
      tpu.vector_store %arg9[%c0_34, %c0_35], %44 {strides = array<i32>} : memref<8x384xf32, #tpu.memory_space<vmem>>, vector<8x384xf32>,
      %c0_36 = arith.constant 0 : index
      %c0_37 = arith.constant 0 : index
      %46 = vector.load %arg10[%c0_36, %c0_37] : memref<8x128xf32, #tpu.memory_space<vmem>>, vector<8x128xf32>
      tpu.vector_store %arg10[%c0_36, %c0_37], %43 {strides = array<i32>} : memref<8x128xf32, #tpu.memory_space<vmem>>, vector<8x128xf32>,
    } else {
    }
    return
  }
  func.func @transform_0(%arg0: i32, %arg1: i32) -> (i32, i32, i32) {
    %c0_i32 = arith.constant 0 : i32
    %c0_i32_0 = arith.constant 0 : i32
    return %arg1, %arg0, %c0_i32 : i32, i32, i32
  }
  func.func @transform_1(%arg0: i32, %arg1: i32) -> (i32, i32, i32) {
    %c0_i32 = arith.constant 0 : i32
    %c0_i32_0 = arith.constant 0 : i32
    return %arg1, %arg0, %c0_i32 : i32, i32, i32
  }
  func.func @transform_2(%arg0: i32, %arg1: i32) -> (i32, i32) {
    %c0_i32 = arith.constant 0 : i32
    %c0_i32_0 = arith.constant 0 : i32
    %c0_i32_1 = arith.constant 0 : i32
    return %c0_i32, %c0_i32_0 : i32, i32
  }
  func.func @transform_3(%arg0: i32, %arg1: i32) -> (i32, i32) {
    %c0_i32 = arith.constant 0 : i32
    %c0_i32_0 = arith.constant 0 : i32
    %c0_i32_1 = arith.constant 0 : i32
    return %c0_i32, %c0_i32_0 : i32, i32
  }
  func.func @transform_4(%arg0: i32, %arg1: i32) -> (i32, i32) {
    %c0_i32 = arith.constant 0 : i32
    %c0_i32_0 = arith.constant 0 : i32
    %c0_i32_1 = arith.constant 0 : i32
    return %c0_i32, %c0_i32_0 : i32, i32
  }
  func.func @transform_5(%arg0: i32, %arg1: i32) -> (i32, i32) {
    %c0_i32 = arith.constant 0 : i32
    %c0_i32_0 = arith.constant 0 : i32
    %c0_i32_1 = arith.constant 0 : i32
    return %c0_i32, %c0_i32_0 : i32, i32
  }
  func.func @transform_6(%arg0: i32, %arg1: i32) -> (i32, i32) {
    %c0_i32 = arith.constant 0 : i32
    %c0_i32_0 = arith.constant 0 : i32
    return %arg0, %c0_i32 : i32, i32
  }
  func.func @transform_7(%arg0: i32, %arg1: i32) -> (i32, i32) {
    %c0_i32 = arith.constant 0 : i32
    %c0_i32_0 = arith.constant 0 : i32
    return %arg0, %c0_i32 : i32, i32
  }
  func.func @transform_8(%arg0: i32, %arg1: i32) -> (i32, i32) {
    %c0_i32 = arith.constant 0 : i32
    %c0_i32_0 = arith.constant 0 : i32
    return %arg0, %c0_i32 : i32, i32
  }
}

</mosaic_0001>

<bundles_post_ra>
// kernel: tpu_custom_call.1
= control target key start
LH: loop header
LB: loop body
LE: loop exit
PB: predicated region body
PF: predicated region fallthrough
CT: control target
= control target key end

     0   :  { %14 = vsyncpa [#allocation5], 0  ;;  %s3484_s0 = inlined_call_operand.vmem [shape: bf16[256,8,128], index: 0, kind: input, shape index: {}]   ;;  %s3485_s1 = inlined_call_operand.vmem [shape: f32[256,8,1], index: 1, kind: input, shape index: {}]   ;;  %s3486_s2 = inlined_call_operand.vmem [shape: f32[128,256], index: 2, kind: input, shape index: {}]   ;;  %s3487_s3 = inlined_call_operand.vmem [shape: f32[1,256], index: 3, kind: input, shape index: {}]   ;;  %s3488_s4 = inlined_call_operand.vmem [shape: f32[128,128], index: 4, kind: input, shape index: {}]   ;;  %s3489_s5 = inlined_call_operand.vmem [shape: f32[1,128], index: 5, kind: input, shape index: {}]   ;;  %s3490_s6 = inlined_call_operand.vmem [shape: f32[8,128], index: 6, kind: input, shape index: {}]   ;;  %s3491_s7 = inlined_call_operand.hbm [shape: f32[8,384], index: 7, kind: output, shape index: {0}]   ;;  %s3492_s8 = inlined_call_operand.hbm [shape: f32[8,128], index: 8, kind: output, shape index: {1}]  }
   0x1   :  { %15 = vsyncpa [#allocation7], 0  ;;  %s2908_s27 = smov 0   ;;  %s2910_s28 = smov 0  }
   0x2   :  { %s2912_s29 = smov 0  }
   0x3 LB: > { %s2275_s30 = sadd.s32 4294967295, %s2853_s29   ;;  %s30_s9 = sadd.s32 1, %s2849_s28  ;;  %s2853_s29 = sphi %s2912_s29, %s21_s29   ;;  %s2849_s28 = sphi %s2910_s28, %s3495_s28   ;;  %s2845_s27 = sphi %s2908_s27, %s3494_s27  }
   0x4   : > { %p31_p0 = scmp.ge.s32.totalorder %s30_s9, 2  ;;  %p2279_p1 = scmp.ge.s32.totalorder %s2853_s29, 1 }
   0x5   : > { %p310_p2 = scmp.lt.s32.totalorder %s2853_s29, 3 }
   0x6   : > { %s3497_s9 = smov (%p31_p0, %s30_s9), 0 }
   0x7   : > { %p311_p3 = pnand %p2279_p1, %p310_p2 }
   0x8   : > { %s2280_s10 = sshll.u32 (!%p311_p3), %s2845_s27, 7  ;;  %p2284_p5 = scmp.ne.s32.totalorder (!%p311_p3), %s2845_s27, 0 }
   0x9   : > { %314 = sbr.rel (%p311_p3) target bundleno = 1025 (0x401), region = 48  ;;  %p355_p4 = scmp.lt.s32.totalorder (!%p311_p3), %s2280_s10, 255 }
  0x10   : > { %s3499_s10 = smov (!%p355_p4, %s2280_s10), 255  ;;  %379 = sbr.rel (%p2284_p5) target bundleno = 23 (0x17), region = 52 }
  0x11   : > { %s2281_s11 = sshll.u32 %s3499_s10, 2  ;;  %s2283_s12 = sshll.u32 %s3499_s10, 3  ;;  %vm381_vm0 = vcmask (!%p2284_p5), 7168   ;;  %v2855_v0 = vmov (!%p2284_p5), 0.0  }
  0x12   : > { %s2933_s15 = scalar_lea.vmem %s3484_s0, %s2281_s11  ;;  %s2938_s18 = scalar_lea.vmem %s3485_s1, %s2283_s12  ;;  %380 = vst [vmem:[#allocation2] sm:$0xff] (!%p2284_p5), %v2855_v0  ;;  %382 = vst.msk [vmem:[#allocation3] sm:$0xff] (!%p2284_p5), %vm381_vm0, %v2855_v0 }
  0x17 PF: > { %v641_v1 = vld [vmem:[%s2938_s18 + $0x10] sm:$0xff]  ;;  %vm1666_vm1 = vcmask 7168   ;;  %v639_v2 = vld [vmem:[%s2938_s18] sm:$0xff]  ;;  %v2856_v3 = vmov 0   ;;  %v640_v5 = vld [vmem:[%s2938_s18 + $0x8] sm:$0xff]  ;;  %p2285_p6 = scmp.ne.s32.totalorder %s2845_s27, 1 }
  0x18   : > { %2765 = vset.pattern.permute.xlu1 %v2856_v3  ;;  %2764 = vset.pattern.permute.xlu0 %v2856_v3  ;;  %v1667_v4 = vsel %vm1666_vm1, %v639_v2, 0.0  ;;  %v1670_v6 = vsel %vm1666_vm1, %v641_v1, 0.0  ;;  %v1668_v7 = vsel %vm1666_vm1, %v640_v5, 0.0  ;;  %v642_v8 = vld [vmem:[%s2938_s18 + $0x18] sm:$0xff]  ;;  %v643_v12 = vld [vmem:[%s2938_s18 + $0x20] sm:$0xff]  ;;  %v644_v15 = vld [vmem:[%s2938_s18 + $0x28] sm:$0xff] }
  0x19   : > { %780 = vperm.xlu1 %2765, %v641_v1   ;;  %770 = vperm.xlu0 %2764, %v639_v2   ;;  %v1669_v9 = vadd.f32 %v1668_v7, %v1667_v4  ;;  %v1672_v10 = vsel %vm1666_vm1, %v642_v8, 0.0  ;;  %v1674_v13 = vsel %vm1666_vm1, %v643_v12, 0.0  ;;  %v1676_v16 = vsel %vm1666_vm1, %v644_v15, 0.0  ;;  %v645_v18 = vld [vmem:[%s2938_s18 + $0x30] sm:$0xff]  ;;  %v646_v21 = vld [vmem:[%s2938_s18 + $0x38] sm:$0xff]  ;;  %v647_v24 = vld [vmem:[%s2938_s18 + $0x40] sm:$0xff] }
  0x1a   : > { %v1678_v19 = vsel %vm1666_vm1, %v645_v18, 0.0  ;;  %v1680_v22 = vsel %vm1666_vm1, %v646_v21, 0.0  ;;  %v1682_v25 = vsel %vm1666_vm1, %v647_v24, 0.0  ;;  %v648_v27 = vld [vmem:[%s2938_s18 + $0x48] sm:$0xff]  ;;  %v649_v30 = vld [vmem:[%s2938_s18 + $0x50] sm:$0xff]  ;;  %v650_v33 = vld [vmem:[%s2938_s18 + $0x58] sm:$0xff] }
  0x1b   : > { %v1671_v11 = vadd.f32 %v1670_v6, %v1669_v9  ;;  %v1684_v28 = vsel %vm1666_vm1, %v648_v27, 0.0  ;;  %v1686_v31 = vsel %vm1666_vm1, %v649_v30, 0.0  ;;  %v1688_v34 = vsel %vm1666_vm1, %v650_v33, 0.0  ;;  %v651_v36 = vld [vmem:[%s2938_s18 + $0x60] sm:$0xff]  ;;  %v652_v39 = vld [vmem:[%s2938_s18 + $0x68] sm:$0xff]  ;;  %v653_v42 = vld [vmem:[%s2938_s18 + $0x70] sm:$0xff] }
  0x1c   : > { %v1690_v37 = vsel %vm1666_vm1, %v651_v36, 0.0  ;;  %v1692_v40 = vsel %vm1666_vm1, %v652_v39, 0.0  ;;  %v1694_v43 = vsel %vm1666_vm1, %v653_v42, 0.0  ;;  %v654_v45 = vld [vmem:[%s2938_s18 + $0x78] sm:$0xff]  ;;  %v655_v48 = vld [vmem:[%s2938_s18 + $0x80] sm:$0xff]  ;;  %v656_v51 = vld [vmem:[%s2938_s18 + $0x88] sm:$0xff] }
  0x1d   : > { %785 = vperm.xlu1 %2765, %v642_v8   ;;  %775 = vperm.xlu0 %2764, %v640_v5   ;;  %v1673_v14 = vadd.f32 %v1672_v10, %v1671_v11  ;;  %v1696_v46 = vsel %vm1666_vm1, %v654_v45, 0.0  ;;  %v1698_v49 = vsel %vm1666_vm1, %v655_v48, 0.0  ;;  %v1700_v52 = vsel %vm1666_vm1, %v656_v51, 0.0  ;;  %v657_v54 = vld [vmem:[%s2938_s18 + $0x90] sm:$0xff]  ;;  %v658_v57 = vld [vmem:[%s2938_s18 + $0x98] sm:$0xff]  ;;  %v659_v60 = vld [vmem:[%s2938_s18 + $0xa0] sm:$0xff] }
  0x1e   : > { %v1702_v55 = vsel %vm1666_vm1, %v657_v54, 0.0  ;;  %v1704_v58 = vsel %vm1666_vm1, %v658_v57, 0.0  ;;  %v1706_v61 = vsel %vm1666_vm1, %v659_v60, 0.0  ;;  %v660_v63 = vld [vmem:[%s2938_s18 + $0xa8] sm:$0xff]  ;;  %v661_v2 = vld [vmem:[%s2938_s18 + $0xb0] sm:$0xff]  ;;  %v662_v5 = vld [vmem:[%s2938_s18 + $0xb8] sm:$0xff] }
  0x1f   : > { %v1675_v17 = vadd.f32 %v1674_v13, %v1673_v14  ;;  %v1708_v0 = vsel %vm1666_vm1, %v660_v63, 0.0  ;;  %v1710_v3 = vsel %vm1666_vm1, %v661_v2, 0.0  ;;  %v1712_v6 = vsel %vm1666_vm1, %v662_v5, 0.0  ;;  %v663_v8 = vld [vmem:[%s2938_s18 + $0xc0] sm:$0xff]  ;;  %v664_v11 = vld [vmem:[%s2938_s18 + $0xc8] sm:$0xff]  ;;  %v665_v14 = vld [vmem:[%s2938_s18 + $0xd0] sm:$0xff] }
  0x20   : > { %v1714_v9 = vsel %vm1666_vm1, %v663_v8, 0.0  ;;  %vm2860_vm2 = vmmov (!%p2285_p6), 0  }
  0x21   : > { %795 = vperm.xlu1 %2765, %v644_v15   ;;  %790 = vperm.xlu0 %2764, %v643_v12   ;;  %v1677_v20 = vadd.f32 %v1676_v16, %v1675_v17  ;;  %v1716_v12 = vsel %vm1666_vm1, %v664_v11, 0.0  ;;  %v1718_v15 = vsel %vm1666_vm1, %v665_v14, 0.0  ;;  %v666_v17 = vld [vmem:[%s2938_s18 + $0xd8] sm:$0xff] }
  0x23   : > { %v1679_v23 = vadd.f32 %v1678_v19, %v1677_v20  ;;  %v667_v20 = vld [vmem:[%s2938_s18 + $0xe0] sm:$0xff] }
  0x25   : > { %805 = vperm.xlu1 %2765, %v646_v21   ;;  %800 = vperm.xlu0 %2764, %v645_v18   ;;  %v1681_v26 = vadd.f32 %v1680_v22, %v1679_v23  ;;  %v1720_v18 = vsel %vm1666_vm1, %v666_v17, 0.0  ;;  %v1722_v21 = vsel %vm1666_vm1, %v667_v20, 0.0  ;;  %v668_v23 = vld [vmem:[%s2938_s18 + $0xe8] sm:$0xff] }
  0x27   : > { %v1683_v29 = vadd.f32 %v1682_v25, %v1681_v26  ;;  %v669_v26 = vld [vmem:[%s2938_s18 + $0xf0] sm:$0xff] }
  0x29   : > { %815 = vperm.xlu1 %2765, %v648_v27   ;;  %810 = vperm.xlu0 %2764, %v647_v24   ;;  %v1685_v32 = vadd.f32 %v1684_v28, %v1683_v29  ;;  %v1724_v24 = vsel %vm1666_vm1, %v668_v23, 0.0  ;;  %v1726_v27 = vsel %vm1666_vm1, %v669_v26, 0.0  ;;  %v670_v29 = vld [vmem:[%s2938_s18 + $0xf8] sm:$0xff] }
  0x2b   : > { %v1687_v35 = vadd.f32 %v1686_v31, %v1685_v32  ;;  %v671_v32 = vld [vmem:[%s2938_s18 + $0x100] sm:$0xff] }
  0x2d   : > { %825 = vperm.xlu1 %2765, %v650_v33   ;;  %820 = vperm.xlu0 %2764, %v649_v30   ;;  %v1689_v38 = vadd.f32 %v1688_v34, %v1687_v35  ;;  %v1728_v30 = vsel %vm1666_vm1, %v670_v29, 0.0  ;;  %v1730_v33 = vsel %vm1666_vm1, %v671_v32, 0.0  ;;  %v672_v35 = vld [vmem:[%s2938_s18 + $0x108] sm:$0xff] }
  0x2f   : > { %v1691_v41 = vadd.f32 %v1690_v37, %v1689_v38  ;;  %v673_v38 = vld [vmem:[%s2938_s18 + $0x110] sm:$0xff] }
  0x31   : > { %835 = vperm.xlu1 %2765, %v652_v39   ;;  %830 = vperm.xlu0 %2764, %v651_v36   ;;  %v1693_v44 = vadd.f32 %v1692_v40, %v1691_v41  ;;  %v1732_v36 = vsel %vm1666_vm1, %v672_v35, 0.0  ;;  %v1734_v39 = vsel %vm1666_vm1, %v673_v38, 0.0  ;;  %v674_v41 = vld [vmem:[%s2938_s18 + $0x118] sm:$0xff] }
  0x33   : > { %v1695_v47 = vadd.f32 %v1694_v43, %v1693_v44  ;;  %v675_v44 = vld [vmem:[%s2938_s18 + $0x120] sm:$0xff] }
  0x35   : > { %845 = vperm.xlu1 %2765, %v654_v45   ;;  %840 = vperm.xlu0 %2764, %v653_v42   ;;  %v1697_v50 = vadd.f32 %v1696_v46, %v1695_v47  ;;  %v1736_v42 = vsel %vm1666_vm1, %v674_v41, 0.0  ;;  %v1738_v45 = vsel %vm1666_vm1, %v675_v44, 0.0  ;;  %v676_v47 = vld [vmem:[%s2938_s18 + $0x128] sm:$0xff] }
  0x37   : > { %v1699_v53 = vadd.f32 %v1698_v49, %v1697_v50  ;;  %v677_v50 = vld [vmem:[%s2938_s18 + $0x130] sm:$0xff] }
  0x39   : > { %855 = vperm.xlu1 %2765, %v656_v51   ;;  %850 = vperm.xlu0 %2764, %v655_v48   ;;  %v1701_v56 = vadd.f32 %v1700_v52, %v1699_v53  ;;  %v1740_v48 = vsel %vm1666_vm1, %v676_v47, 0.0  ;;  %v1742_v51 = vsel %vm1666_vm1, %v677_v50, 0.0  ;;  %v678_v53 = vld [vmem:[%s2938_s18 + $0x138] sm:$0xff] }
  0x3b   : > { %v1703_v59 = vadd.f32 %v1702_v55, %v1701_v56  ;;  %v679_v56 = vld [vmem:[%s2938_s18 + $0x140] sm:$0xff] }
  0x3d   : > { %865 = vperm.xlu1 %2765, %v658_v57   ;;  %860 = vperm.xlu0 %2764, %v657_v54   ;;  %v1705_v62 = vadd.f32 %v1704_v58, %v1703_v59  ;;  %v1744_v54 = vsel %vm1666_vm1, %v678_v53, 0.0  ;;  %v1746_v57 = vsel %vm1666_vm1, %v679_v56, 0.0  ;;  %v680_v59 = vld [vmem:[%s2938_s18 + $0x148] sm:$0xff] }
  0x3f   : > { %v1707_v1 = vadd.f32 %v1706_v61, %v1705_v62  ;;  %v681_v62 = vld [vmem:[%s2938_s18 + $0x150] sm:$0xff] }
  0x41   : > { %875 = vperm.xlu1 %2765, %v660_v63   ;;  %870 = vperm.xlu0 %2764, %v659_v60   ;;  %v1709_v4 = vadd.f32 %v1708_v0, %v1707_v1  ;;  %v1748_v60 = vsel %vm1666_vm1, %v680_v59, 0.0  ;;  %v1750_v63 = vsel %vm1666_vm1, %v681_v62, 0.0  ;;  %v682_v1 = vld [vmem:[%s2938_s18 + $0x158] sm:$0xff] }
  0x43   : > { %v1711_v7 = vadd.f32 %v1710_v3, %v1709_v4  ;;  %v683_v4 = vld [vmem:[%s2938_s18 + $0x160] sm:$0xff] }
  0x45   : > { %885 = vperm.xlu1 %2765, %v662_v5   ;;  %880 = vperm.xlu0 %2764, %v661_v2   ;;  %v1713_v10 = vadd.f32 %v1712_v6, %v1711_v7  ;;  %v1752_v2 = vsel %vm1666_vm1, %v682_v1, 0.0  ;;  %v1754_v5 = vsel %vm1666_vm1, %v683_v4, 0.0  ;;  %v684_v7 = vld [vmem:[%s2938_s18 + $0x168] sm:$0xff] }
  0x47   : > { %v1715_v13 = vadd.f32 %v1714_v9, %v1713_v10  ;;  %v685_v10 = vld [vmem:[%s2938_s18 + $0x170] sm:$0xff] }
  0x49   : > { %895 = vperm.xlu1 %2765, %v664_v11   ;;  %890 = vperm.xlu0 %2764, %v663_v8   ;;  %v1717_v16 = vadd.f32 %v1716_v12, %v1715_v13  ;;  %v1756_v8 = vsel %vm1666_vm1, %v684_v7, 0.0  ;;  %v1758_v11 = vsel %vm1666_vm1, %v685_v10, 0.0  ;;  %v686_v12 = vld [vmem:[%s2938_s18 + $0x178] sm:$0xff] }
  0x4b   : > { %v1719_v19 = vadd.f32 %v1718_v15, %v1717_v16  ;;  %v687_v16 = vld [vmem:[%s2938_s18 + $0x180] sm:$0xff] }
  0x4d   : > { %905 = vperm.xlu1 %2765, %v666_v17   ;;  %900 = vperm.xlu0 %2764, %v665_v14   ;;  %v1721_v22 = vadd.f32 %v1720_v18, %v1719_v19  ;;  %v1760_v14 = vsel %vm1666_vm1, %v686_v12, 0.0  ;;  %v1762_v17 = vsel %vm1666_vm1, %v687_v16, 0.0  ;;  %v688_v18 = vld [vmem:[%s2938_s18 + $0x188] sm:$0xff] }
  0x4f   : > { %v1723_v25 = vadd.f32 %v1722_v21, %v1721_v22  ;;  %v689_v22 = vld [vmem:[%s2938_s18 + $0x190] sm:$0xff] }
  0x51   : > { %915 = vperm.xlu1 %2765, %v668_v23   ;;  %910 = vperm.xlu0 %2764, %v667_v20   ;;  %v1725_v28 = vadd.f32 %v1724_v24, %v1723_v25  ;;  %v1764_v20 = vsel %vm1666_vm1, %v688_v18, 0.0  ;;  %v1766_v23 = vsel %vm1666_vm1, %v689_v22, 0.0  ;;  %v690_v24 = vld [vmem:[%s2938_s18 + $0x198] sm:$0xff] }
  0x53   : > { %v1727_v31 = vadd.f32 %v1726_v27, %v1725_v28  ;;  %v691_v28 = vld [vmem:[%s2938_s18 + $0x1a0] sm:$0xff] }
  0x55   : > { %925 = vperm.xlu1 %2765, %v670_v29   ;;  %920 = vperm.xlu0 %2764, %v669_v26   ;;  %v1729_v34 = vadd.f32 %v1728_v30, %v1727_v31  ;;  %v1768_v26 = vsel %vm1666_vm1, %v690_v24, 0.0  ;;  %v1770_v29 = vsel %vm1666_vm1, %v691_v28, 0.0  ;;  %v692_v30 = vld [vmem:[%s2938_s18 + $0x1a8] sm:$0xff] }
  0x57   : > { %v1731_v37 = vadd.f32 %v1730_v33, %v1729_v34  ;;  %v693_v34 = vld [vmem:[%s2938_s18 + $0x1b0] sm:$0xff] }
  0x59   : > { %935 = vperm.xlu1 %2765, %v672_v35   ;;  %930 = vperm.xlu0 %2764, %v671_v32   ;;  %v1733_v40 = vadd.f32 %v1732_v36, %v1731_v37  ;;  %v1772_v32 = vsel %vm1666_vm1, %v692_v30, 0.0  ;;  %v1774_v35 = vsel %vm1666_vm1, %v693_v34, 0.0  ;;  %v694_v36 = vld [vmem:[%s2938_s18 + $0x1b8] sm:$0xff] }
  0x5b   : > { %v1735_v43 = vadd.f32 %v1734_v39, %v1733_v40  ;;  %v695_v40 = vld [vmem:[%s2938_s18 + $0x1c0] sm:$0xff] }
  0x5d   : > { %945 = vperm.xlu1 %2765, %v674_v41   ;;  %940 = vperm.xlu0 %2764, %v673_v38   ;;  %v1737_v46 = vadd.f32 %v1736_v42, %v1735_v43  ;;  %v1776_v38 = vsel %vm1666_vm1, %v694_v36, 0.0  ;;  %v1778_v41 = vsel %vm1666_vm1, %v695_v40, 0.0  ;;  %v696_v42 = vld [vmem:[%s2938_s18 + $0x1c8] sm:$0xff] }
  0x5f   : > { %v1739_v49 = vadd.f32 %v1738_v45, %v1737_v46  ;;  %v697_v46 = vld [vmem:[%s2938_s18 + $0x1d0] sm:$0xff] }
  0x61   : > { %955 = vperm.xlu1 %2765, %v676_v47   ;;  %950 = vperm.xlu0 %2764, %v675_v44   ;;  %v1741_v52 = vadd.f32 %v1740_v48, %v1739_v49  ;;  %v1780_v44 = vsel %vm1666_vm1, %v696_v42, 0.0  ;;  %v1782_v47 = vsel %vm1666_vm1, %v697_v46, 0.0  ;;  %v698_v48 = vld [vmem:[%s2938_s18 + $0x1d8] sm:$0xff] }
  0x63   : > { %v1743_v55 = vadd.f32 %v1742_v51, %v1741_v52  ;;  %v699_v52 = vld [vmem:[%s2938_s18 + $0x1e0] sm:$0xff] }
  0x65   : > { %965 = vperm.xlu1 %2765, %v678_v53   ;;  %960 = vperm.xlu0 %2764, %v677_v50   ;;  %v1745_v58 = vadd.f32 %v1744_v54, %v1743_v55  ;;  %v1784_v50 = vsel %vm1666_vm1, %v698_v48, 0.0  ;;  %v1786_v53 = vsel %vm1666_vm1, %v699_v52, 0.0  ;;  %v700_v54 = vld [vmem:[%s2938_s18 + $0x1e8] sm:$0xff] }
  0x67   : > { %v1747_v61 = vadd.f32 %v1746_v57, %v1745_v58  ;;  %v701_v58 = vld [vmem:[%s2938_s18 + $0x1f0] sm:$0xff] }
  0x69   : > { %975 = vperm.xlu1 %2765, %v680_v59   ;;  %970 = vperm.xlu0 %2764, %v679_v56   ;;  %v1749_v0 = vadd.f32 %v1748_v60, %v1747_v61  ;;  %v1788_v56 = vsel %vm1666_vm1, %v700_v54, 0.0  ;;  %v1790_v59 = vsel %vm1666_vm1, %v701_v58, 0.0  ;;  %v702_v60 = vld [vmem:[%s2938_s18 + $0x1f8] sm:$0xff] }
  0x6b   : > { %v1751_v3 = vadd.f32 %v1750_v63, %v1749_v0  ;;  %v703_v0 = vld [vmem:[%s2938_s18 + $0x200] sm:$0xff] }
  0x6d   : > { %985 = vperm.xlu1 %2765, %v682_v1   ;;  %980 = vperm.xlu0 %2764, %v681_v62   ;;  %v1753_v6 = vadd.f32 %v1752_v2, %v1751_v3  ;;  %v1792_v62 = vsel %vm1666_vm1, %v702_v60, 0.0  ;;  %v1794_v1 = vsel %vm1666_vm1, %v703_v0, 0.0  ;;  %v2294_v2 = vld [vmem:[%s2933_s15] sm:$0xff]   ;;  %v704_v3 = vld [vmem:[%s2938_s18 + $0x208] sm:$0xff] }
  0x6f   : > { %v1755_v9 = vadd.f32 %v1754_v5, %v1753_v6  ;;  %v1796_v5 = vsel %vm1666_vm1, %v704_v3, 0.0 }
  0x71   : > { %995 = vperm.xlu1 %2765, %v684_v7   ;;  %990 = vperm.xlu0 %2764, %v683_v4   ;;  %v1757_v13 = vadd.f32 %v1756_v8, %v1755_v9  ;;  %v2549_v7 = vld [vmem:[%s2933_s15 + $0x8] sm:$0xff]  }
  0x73   : > { %v1759_v15 = vadd.f32 %v1758_v11, %v1757_v13  ;;  %v2295_v11 = vunpack.c.l.bf16 %v2294_v2 }
  0x75   : > { %1005 = vperm.xlu1 %2765, %v686_v12   ;;  %1000 = vperm.xlu0 %2764, %v685_v10   ;;  %v1761_v19 = vadd.f32 %v1760_v14, %v1759_v15  ;;  %v705_v10 = vld [vmem:[%s2938_s18 + $0x210] sm:$0xff]  ;;  %v2296_v12 = vunpack.c.h.bf16 %v2294_v2  ;;  %v706_v14 = vld [vmem:[%s2938_s18 + $0x218] sm:$0xff]  ;;  %v2553_v2 = vld [vmem:[%s2933_s15 + $0x28] sm:$0xff]  }
  0x76   : > { %v1798_v13 = vsel %vm1666_vm1, %v705_v10, 0.0 }
  0x77   : > { %v1763_v21 = vadd.f32 %v1762_v17, %v1761_v19  ;;  %v1800_v17 = vsel %vm1666_vm1, %v706_v14, 0.0 }
  0x79   : > { %1015 = vperm.xlu1 %2765, %v688_v18   ;;  %1010 = vperm.xlu0 %2764, %v687_v16   ;;  %v1765_v25 = vadd.f32 %v1764_v20, %v1763_v21  ;;  %v2299_v16 = vunpack.c.l.bf16 %v2549_v7  ;;  %v2550_v21 = vld [vmem:[%s2933_s15 + $0x10] sm:$0xff]  }
  0x7b   : > { %v1767_v27 = vadd.f32 %v1766_v23, %v1765_v25 }
  0x7d   : > { %1025 = vperm.xlu1 %2765, %v690_v24   ;;  %1020 = vperm.xlu0 %2764, %v689_v22   ;;  %v1769_v31 = vadd.f32 %v1768_v26, %v1767_v27  ;;  %v707_v22 = vld [vmem:[%s2938_s18 + $0x220] sm:$0xff]  ;;  %v2300_v24 = vunpack.c.h.bf16 %v2549_v7  ;;  %v708_v27 = vld [vmem:[%s2938_s18 + $0x228] sm:$0xff] }
  0x7e   : > { %v1802_v26 = vsel %vm1666_vm1, %v707_v22, 0.0 }
  0x7f   : > { %v1771_v33 = vadd.f32 %v1770_v29, %v1769_v31  ;;  %v2303_v31 = vunpack.c.l.bf16 %v2550_v21 }
  0x81   : > { %1035 = vperm.xlu1 %2765, %v692_v30   ;;  %1030 = vperm.xlu0 %2764, %v691_v28   ;;  %v1773_v37 = vadd.f32 %v1772_v32, %v1771_v33  ;;  %v1804_v32 = vsel %vm1666_vm1, %v708_v27, 0.0 }
  0x83   : > { %v1775_v39 = vadd.f32 %v1774_v35, %v1773_v37  ;;  %v709_v37 = vld [vmem:[%s2938_s18 + $0x230] sm:$0xff] }
  0x85   : > { %1045 = vperm.xlu1 %2765, %v694_v36   ;;  %1040 = vperm.xlu0 %2764, %v693_v34   ;;  %v1777_v43 = vadd.f32 %v1776_v38, %v1775_v39  ;;  %v2551_v36 = vld [vmem:[%s2933_s15 + $0x18] sm:$0xff]  }
  0x87   : > { %v1779_v45 = vadd.f32 %v1778_v41, %v1777_v43  ;;  %v1806_v41 = vsel %vm1666_vm1, %v709_v37, 0.0 }
  0x89   : > { %1055 = vperm.xlu1 %2765, %v696_v42   ;;  %1050 = vperm.xlu0 %2764, %v695_v40   ;;  %v1781_v49 = vadd.f32 %v1780_v44, %v1779_v45  ;;  %v2304_v40 = vunpack.c.h.bf16 %v2550_v21  ;;  %v710_v42 = vld [vmem:[%s2938_s18 + $0x238] sm:$0xff]  ;;  %v2316_v21 = vunpack.c.h.bf16 %v2553_v2 }
  0x8b   : > { %v1783_v51 = vadd.f32 %v1782_v47, %v1781_v49  ;;  %v1808_v47 = vsel %vm1666_vm1, %v710_v42, 0.0 }
  0x8d   : > { %1065 = vperm.xlu1 %2765, %v698_v48   ;;  %1060 = vperm.xlu0 %2764, %v697_v46   ;;  %v1785_v55 = vadd.f32 %v1784_v50, %v1783_v51  ;;  %v2307_v46 = vunpack.c.l.bf16 %v2551_v36  ;;  %v2552_v51 = vld [vmem:[%s2933_s15 + $0x20] sm:$0xff]  }
  0x8f   : > { %v1787_v57 = vadd.f32 %v1786_v53, %v1785_v55  ;;  %v2308_v55 = vunpack.c.h.bf16 %v2551_v36 }
  0x91   : > { %1075 = vperm.xlu1 %2765, %v700_v54   ;;  %1070 = vperm.xlu0 %2764, %v699_v52   ;;  %v1789_v61 = vadd.f32 %v1788_v56, %v1787_v57  ;;  %v711_v52 = vld [vmem:[%s2938_s18 + $0x240] sm:$0xff]  ;;  %v712_v57 = vld [vmem:[%s2938_s18 + $0x248] sm:$0xff] }
  0x92   : > { %v1810_v56 = vsel %vm1666_vm1, %v711_v52, 0.0 }
  0x93   : > { %v1791_v63 = vadd.f32 %v1790_v59, %v1789_v61  ;;  %v2311_v61 = vunpack.c.l.bf16 %v2552_v51 }
  0x95   : > { %1085 = vperm.xlu1 %2765, %v702_v60   ;;  %1080 = vperm.xlu0 %2764, %v701_v58   ;;  %v1793_v4 = vadd.f32 %v1792_v62, %v1791_v63  ;;  %v1812_v62 = vsel %vm1666_vm1, %v712_v57, 0.0 }
  0x97   : > { %v1795_v9 = vadd.f32 %v1794_v1, %v1793_v4 }
  0x98   : > { %v781_v6 = vpop.permute.xlu1 %780  ;;  %v771_v8 = vpop.permute.xlu0 %770 }
  0x99   : > { %1095 = vperm.xlu1 %2765, %v704_v3   ;;  %1090 = vperm.xlu0 %2764, %v703_v0   ;;  %v1797_v15 = vadd.f32 %v1796_v5, %v1795_v9  ;;  %v1408_v23 = vmul.f32 %v2295_v11, %v771_v8  ;;  %v1410_v29 = vmul.f32 %v2299_v16, %v781_v6  ;;  %v713_v3 = vld [vmem:[%s2938_s18 + $0x250] sm:$0xff]  ;;  %v2312_v6 = vunpack.c.h.bf16 %v2552_v51  ;;  %v714_v8 = vld [vmem:[%s2938_s18 + $0x258] sm:$0xff] }
  0x9a   : > { %v1814_v7 = vsel %vm1666_vm1, %v713_v3, 0.0 }
  0x9b   : > { %v1799_v20 = vadd.f32 %v1798_v13, %v1797_v15  ;;  %v1816_v13 = vsel %vm1666_vm1, %v714_v8, 0.0 }
  0x9c   : > { %v786_v18 = vpop.permute.xlu1 %785  ;;  %v776_v19 = vpop.permute.xlu0 %775 }
  0x9d   : > { %v1409_v25 = vmul.f32 %v2296_v12, %v776_v19  ;;  %1105 = vperm.xlu1 %2765, %v706_v14   ;;  %1100 = vperm.xlu0 %2764, %v705_v10   ;;  %v1801_v28 = vadd.f32 %v1800_v17, %v1799_v20  ;;  %v1411_v38 = vmul.f32 %v2300_v24, %v786_v18  ;;  %v2315_v12 = vunpack.c.l.bf16 %v2553_v2  ;;  %v2554_v17 = vld [vmem:[%s2933_s15 + $0x30] sm:$0xff]   ;;  %v715_v18 = vld [vmem:[%s2938_s18 + $0x260] sm:$0xff] }
  0x9e   : > { %v2320_v36 = vunpack.c.h.bf16 %v2554_v17 }
  0x9f   : > { %v1536_v30 = vadd.f32 %v1409_v25, %v1408_v23  ;;  %v1803_v35 = vadd.f32 %v1802_v26, %v1801_v28  ;;  %v716_v23 = vld [vmem:[%s2938_s18 + $0x268] sm:$0xff] }
  0xa0   : > { %v796_v33 = vpop.permute.xlu1 %795  ;;  %v791_v34 = vpop.permute.xlu0 %790  ;;  %v1820_v28 = vsel %vm1666_vm1, %v716_v23, 0.0 }
  0xa1   : > { %v1537_v39 = vadd.f32 %v1536_v30, %v1410_v29  ;;  %1115 = vperm.xlu1 %2765, %v708_v27   ;;  %1110 = vperm.xlu0 %2764, %v707_v22   ;;  %v1805_v43 = vadd.f32 %v1804_v32, %v1803_v35  ;;  %v1412_v45 = vmul.f32 %v2303_v31, %v791_v34  ;;  %v1818_v22 = vsel %vm1666_vm1, %v715_v18, 0.0  ;;  %v2555_v32 = vld [vmem:[%s2933_s15 + $0x38] sm:$0xff]  }
  0xa2   : > { %v1413_v53 = vmul.f32 %v2304_v40, %v796_v33  ;;  %v2319_v27 = vunpack.c.l.bf16 %v2554_v17  ;;  %v717_v33 = vld [vmem:[%s2938_s18 + $0x270] sm:$0xff]  ;;  %v2324_v51 = vunpack.c.h.bf16 %v2555_v32 }
  0xa3   : > { %v1538_v44 = vadd.f32 %v1537_v39, %v1411_v38  ;;  %v1807_v50 = vadd.f32 %v1806_v41, %v1805_v43  ;;  %v718_v38 = vld [vmem:[%s2938_s18 + $0x278] sm:$0xff] }
  0xa4   : > { %v806_v48 = vpop.permute.xlu1 %805  ;;  %v801_v49 = vpop.permute.xlu0 %800  ;;  %v1824_v43 = vsel %vm1666_vm1, %v718_v38, 0.0 }
  0xa5   : > { %v1539_v54 = vadd.f32 %v1538_v44, %v1412_v45  ;;  %1125 = vperm.xlu1 %2765, %v710_v42   ;;  %1120 = vperm.xlu0 %2764, %v709_v37   ;;  %v1809_v58 = vadd.f32 %v1808_v47, %v1807_v50  ;;  %v1414_v60 = vmul.f32 %v2307_v46, %v801_v49  ;;  %v1822_v37 = vsel %vm1666_vm1, %v717_v33, 0.0  ;;  %v2556_v47 = vld [vmem:[%s2933_s15 + $0x40] sm:$0xff]  }
  0xa6   : > { %v1415_v4 = vmul.f32 %v2308_v55, %v806_v48  ;;  %v2323_v42 = vunpack.c.l.bf16 %v2555_v32  ;;  %v719_v48 = vld [vmem:[%s2938_s18 + $0x280] sm:$0xff]  ;;  %v2328_v2 = vunpack.c.h.bf16 %v2556_v47 }
  0xa7   : > { %v1540_v59 = vadd.f32 %v1539_v54, %v1413_v53  ;;  %v1811_v1 = vadd.f32 %v1810_v56, %v1809_v58  ;;  %v720_v53 = vld [vmem:[%s2938_s18 + $0x288] sm:$0xff] }
  0xa8   : > { %v816_v63 = vpop.permute.xlu1 %815  ;;  %v811_v0 = vpop.permute.xlu0 %810  ;;  %v1828_v58 = vsel %vm1666_vm1, %v720_v53, 0.0 }
  0xa9   : > { %v1541_v5 = vadd.f32 %v1540_v59, %v1414_v60  ;;  %1135 = vperm.xlu1 %2765, %v712_v57   ;;  %1130 = vperm.xlu0 %2764, %v711_v52   ;;  %v1813_v9 = vadd.f32 %v1812_v62, %v1811_v1  ;;  %v1416_v11 = vmul.f32 %v2311_v61, %v811_v0  ;;  %v1826_v52 = vsel %vm1666_vm1, %v719_v48, 0.0  ;;  %v2557_v62 = vld [vmem:[%s2933_s15 + $0x48] sm:$0xff]  }
  0xaa   : > { %v1417_v19 = vmul.f32 %v2312_v6, %v816_v63  ;;  %v2327_v57 = vunpack.c.l.bf16 %v2556_v47  ;;  %v721_v63 = vld [vmem:[%s2938_s18 + $0x290] sm:$0xff]  ;;  %v2332_v17 = vunpack.c.h.bf16 %v2557_v62 }
  0xab   : > { %v1542_v10 = vadd.f32 %v1541_v5, %v1415_v4  ;;  %v1815_v16 = vadd.f32 %v1814_v7, %v1813_v9  ;;  %v722_v4 = vld [vmem:[%s2938_s18 + $0x298] sm:$0xff] }
  0xac   : > { %v826_v14 = vpop.permute.xlu1 %825  ;;  %v821_v15 = vpop.permute.xlu0 %820  ;;  %v1832_v9 = vsel %vm1666_vm1, %v722_v4, 0.0 }
  0xad   : > { %v1543_v20 = vadd.f32 %v1542_v10, %v1416_v11  ;;  %1145 = vperm.xlu1 %2765, %v714_v8   ;;  %1140 = vperm.xlu0 %2764, %v713_v3   ;;  %v1817_v24 = vadd.f32 %v1816_v13, %v1815_v16  ;;  %v1418_v26 = vmul.f32 %v2315_v12, %v821_v15  ;;  %v1830_v3 = vsel %vm1666_vm1, %v721_v63, 0.0  ;;  %v2558_v13 = vld [vmem:[%s2933_s15 + $0x50] sm:$0xff]  }
  0xae   : > { %v1419_v34 = vmul.f32 %v2316_v21, %v826_v14  ;;  %v2331_v8 = vunpack.c.l.bf16 %v2557_v62  ;;  %v723_v14 = vld [vmem:[%s2938_s18 + $0x2a0] sm:$0xff]  ;;  %v2336_v32 = vunpack.c.h.bf16 %v2558_v13 }
  0xaf   : > { %v1544_v25 = vadd.f32 %v1543_v20, %v1417_v19  ;;  %v1819_v31 = vadd.f32 %v1818_v22, %v1817_v24  ;;  %v724_v19 = vld [vmem:[%s2938_s18 + $0x2a8] sm:$0xff] }
  0xb0   : > { %v836_v29 = vpop.permute.xlu1 %835  ;;  %v831_v30 = vpop.permute.xlu0 %830  ;;  %v1836_v24 = vsel %vm1666_vm1, %v724_v19, 0.0 }
  0xb1   : > { %v1545_v35 = vadd.f32 %v1544_v25, %v1418_v26  ;;  %1155 = vperm.xlu1 %2765, %v716_v23   ;;  %1150 = vperm.xlu0 %2764, %v715_v18   ;;  %v1821_v39 = vadd.f32 %v1820_v28, %v1819_v31  ;;  %v1420_v41 = vmul.f32 %v2319_v27, %v831_v30  ;;  %v1834_v18 = vsel %vm1666_vm1, %v723_v14, 0.0  ;;  %v2559_v28 = vld [vmem:[%s2933_s15 + $0x58] sm:$0xff]  }
  0xb2   : > { %v1421_v49 = vmul.f32 %v2320_v36, %v836_v29  ;;  %v2335_v23 = vunpack.c.l.bf16 %v2558_v13  ;;  %v725_v29 = vld [vmem:[%s2938_s18 + $0x2b0] sm:$0xff]  ;;  %v2340_v47 = vunpack.c.h.bf16 %v2559_v28 }
  0xb3   : > { %v1546_v40 = vadd.f32 %v1545_v35, %v1419_v34  ;;  %v1823_v46 = vadd.f32 %v1822_v37, %v1821_v39  ;;  %v726_v34 = vld [vmem:[%s2938_s18 + $0x2b8] sm:$0xff] }
  0xb4   : > { %v846_v44 = vpop.permute.xlu1 %845  ;;  %v841_v45 = vpop.permute.xlu0 %840  ;;  %v1840_v39 = vsel %vm1666_vm1, %v726_v34, 0.0 }
  0xb5   : > { %v1547_v50 = vadd.f32 %v1546_v40, %v1420_v41  ;;  %1165 = vperm.xlu1 %2765, %v718_v38   ;;  %1160 = vperm.xlu0 %2764, %v717_v33   ;;  %v1825_v54 = vadd.f32 %v1824_v43, %v1823_v46  ;;  %v1422_v56 = vmul.f32 %v2323_v42, %v841_v45  ;;  %v1838_v33 = vsel %vm1666_vm1, %v725_v29, 0.0  ;;  %v2560_v43 = vld [vmem:[%s2933_s15 + $0x60] sm:$0xff]  }
  0xb6   : > { %v1423_v0 = vmul.f32 %v2324_v51, %v846_v44  ;;  %v2339_v38 = vunpack.c.l.bf16 %v2559_v28  ;;  %v727_v44 = vld [vmem:[%s2938_s18 + $0x2c0] sm:$0xff]  ;;  %v2344_v62 = vunpack.c.h.bf16 %v2560_v43 }
  0xb7   : > { %v1548_v55 = vadd.f32 %v1547_v50, %v1421_v49  ;;  %v1827_v61 = vadd.f32 %v1826_v52, %v1825_v54  ;;  %v728_v49 = vld [vmem:[%s2938_s18 + $0x2c8] sm:$0xff] }
  0xb8   : > { %v856_v59 = vpop.permute.xlu1 %855  ;;  %v851_v60 = vpop.permute.xlu0 %850  ;;  %v1844_v54 = vsel %vm1666_vm1, %v728_v49, 0.0 }
  0xb9   : > { %v1549_v1 = vadd.f32 %v1548_v55, %v1422_v56  ;;  %1175 = vperm.xlu1 %2765, %v720_v53   ;;  %1170 = vperm.xlu0 %2764, %v719_v48   ;;  %v1829_v5 = vadd.f32 %v1828_v58, %v1827_v61  ;;  %v1424_v7 = vmul.f32 %v2327_v57, %v851_v60  ;;  %v1842_v48 = vsel %vm1666_vm1, %v727_v44, 0.0  ;;  %v2561_v58 = vld [vmem:[%s2933_s15 + $0x68] sm:$0xff]  }
  0xba   : > { %v1425_v15 = vmul.f32 %v2328_v2, %v856_v59  ;;  %v2343_v53 = vunpack.c.l.bf16 %v2560_v43  ;;  %v729_v59 = vld [vmem:[%s2938_s18 + $0x2d0] sm:$0xff]  ;;  %v2348_v13 = vunpack.c.h.bf16 %v2561_v58 }
  0xbb   : > { %v1550_v6 = vadd.f32 %v1549_v1, %v1423_v0  ;;  %v1831_v12 = vadd.f32 %v1830_v3, %v1829_v5  ;;  %v730_v0 = vld [vmem:[%s2938_s18 + $0x2d8] sm:$0xff] }
  0xbc   : > { %v866_v10 = vpop.permute.xlu1 %865  ;;  %v861_v11 = vpop.permute.xlu0 %860  ;;  %v1848_v5 = vsel %vm1666_vm1, %v730_v0, 0.0 }
  0xbd   : > { %v1551_v16 = vadd.f32 %v1550_v6, %v1424_v7  ;;  %1185 = vperm.xlu1 %2765, %v722_v4   ;;  %1180 = vperm.xlu0 %2764, %v721_v63   ;;  %v1833_v20 = vadd.f32 %v1832_v9, %v1831_v12  ;;  %v1426_v22 = vmul.f32 %v2331_v8, %v861_v11  ;;  %v1846_v63 = vsel %vm1666_vm1, %v729_v59, 0.0  ;;  %v2562_v9 = vld [vmem:[%s2933_s15 + $0x70] sm:$0xff]  }
  0xbe   : > { %v1427_v30 = vmul.f32 %v2332_v17, %v866_v10  ;;  %v2347_v4 = vunpack.c.l.bf16 %v2561_v58  ;;  %v731_v10 = vld [vmem:[%s2938_s18 + $0x2e0] sm:$0xff]  ;;  %v2352_v28 = vunpack.c.h.bf16 %v2562_v9 }
  0xbf   : > { %v1552_v21 = vadd.f32 %v1551_v16, %v1425_v15  ;;  %v1835_v27 = vadd.f32 %v1834_v18, %v1833_v20  ;;  %v732_v15 = vld [vmem:[%s2938_s18 + $0x2e8] sm:$0xff] }
  0xc0   : > { %v876_v25 = vpop.permute.xlu1 %875  ;;  %v871_v26 = vpop.permute.xlu0 %870  ;;  %v1852_v20 = vsel %vm1666_vm1, %v732_v15, 0.0 }
  0xc1   : > { %v1553_v31 = vadd.f32 %v1552_v21, %v1426_v22  ;;  %1195 = vperm.xlu1 %2765, %v724_v19   ;;  %1190 = vperm.xlu0 %2764, %v723_v14   ;;  %v1837_v35 = vadd.f32 %v1836_v24, %v1835_v27  ;;  %v1428_v37 = vmul.f32 %v2335_v23, %v871_v26  ;;  %v1850_v14 = vsel %vm1666_vm1, %v731_v10, 0.0  ;;  %v2563_v24 = vld [vmem:[%s2933_s15 + $0x78] sm:$0xff]  }
  0xc2   : > { %v1429_v45 = vmul.f32 %v2336_v32, %v876_v25  ;;  %v2351_v19 = vunpack.c.l.bf16 %v2562_v9  ;;  %v733_v25 = vld [vmem:[%s2938_s18 + $0x2f0] sm:$0xff]  ;;  %v2356_v43 = vunpack.c.h.bf16 %v2563_v24 }
  0xc3   : > { %v1554_v36 = vadd.f32 %v1553_v31, %v1427_v30  ;;  %v1839_v42 = vadd.f32 %v1838_v33, %v1837_v35  ;;  %v734_v30 = vld [vmem:[%s2938_s18 + $0x2f8] sm:$0xff] }
  0xc4   : > { %v886_v40 = vpop.permute.xlu1 %885  ;;  %v881_v41 = vpop.permute.xlu0 %880  ;;  %v1856_v35 = vsel %vm1666_vm1, %v734_v30, 0.0 }
  0xc5   : > { %v1555_v46 = vadd.f32 %v1554_v36, %v1428_v37  ;;  %1205 = vperm.xlu1 %2765, %v726_v34   ;;  %1200 = vperm.xlu0 %2764, %v725_v29   ;;  %v1841_v50 = vadd.f32 %v1840_v39, %v1839_v42  ;;  %v1430_v52 = vmul.f32 %v2339_v38, %v881_v41  ;;  %v1854_v29 = vsel %vm1666_vm1, %v733_v25, 0.0  ;;  %v2564_v39 = vld [vmem:[%s2933_s15 + $0x80] sm:$0xff]  }
  0xc6   : > { %v1431_v60 = vmul.f32 %v2340_v47, %v886_v40  ;;  %v2355_v34 = vunpack.c.l.bf16 %v2563_v24  ;;  %v735_v40 = vld [vmem:[%s2938_s18 + $0x300] sm:$0xff]  ;;  %v2360_v58 = vunpack.c.h.bf16 %v2564_v39 }
  0xc7   : > { %v1556_v51 = vadd.f32 %v1555_v46, %v1429_v45  ;;  %v1843_v57 = vadd.f32 %v1842_v48, %v1841_v50  ;;  %v736_v45 = vld [vmem:[%s2938_s18 + $0x308] sm:$0xff] }
  0xc8   : > { %v896_v55 = vpop.permute.xlu1 %895  ;;  %v891_v56 = vpop.permute.xlu0 %890  ;;  %v1860_v50 = vsel %vm1666_vm1, %v736_v45, 0.0 }
  0xc9   : > { %v1557_v61 = vadd.f32 %v1556_v51, %v1430_v52  ;;  %1215 = vperm.xlu1 %2765, %v728_v49   ;;  %1210 = vperm.xlu0 %2764, %v727_v44   ;;  %v1845_v1 = vadd.f32 %v1844_v54, %v1843_v57  ;;  %v1432_v3 = vmul.f32 %v2343_v53, %v891_v56  ;;  %v1858_v44 = vsel %vm1666_vm1, %v735_v40, 0.0  ;;  %v2565_v54 = vld [vmem:[%s2933_s15 + $0x88] sm:$0xff]  }
  0xca   : > { %v1433_v11 = vmul.f32 %v2344_v62, %v896_v55  ;;  %v2359_v49 = vunpack.c.l.bf16 %v2564_v39  ;;  %v737_v55 = vld [vmem:[%s2938_s18 + $0x310] sm:$0xff]  ;;  %v2364_v9 = vunpack.c.h.bf16 %v2565_v54 }
  0xcb   : > { %v1558_v2 = vadd.f32 %v1557_v61, %v1431_v60  ;;  %v1847_v8 = vadd.f32 %v1846_v63, %v1845_v1  ;;  %v738_v61 = vld [vmem:[%s2938_s18 + $0x318] sm:$0xff] }
  0xcc   : > { %v906_v6 = vpop.permute.xlu1 %905  ;;  %v901_v7 = vpop.permute.xlu0 %900  ;;  %v1864_v1 = vsel %vm1666_vm1, %v738_v61, 0.0 }
  0xcd   : > { %v1559_v12 = vadd.f32 %v1558_v2, %v1432_v3  ;;  %1225 = vperm.xlu1 %2765, %v730_v0   ;;  %1220 = vperm.xlu0 %2764, %v729_v59   ;;  %v1849_v16 = vadd.f32 %v1848_v5, %v1847_v8  ;;  %v1434_v18 = vmul.f32 %v2347_v4, %v901_v7  ;;  %v1862_v59 = vsel %vm1666_vm1, %v737_v55, 0.0  ;;  %v2566_v5 = vld [vmem:[%s2933_s15 + $0x90] sm:$0xff]  }
  0xce   : > { %v1435_v26 = vmul.f32 %v2348_v13, %v906_v6  ;;  %v2363_v0 = vunpack.c.l.bf16 %v2565_v54  ;;  %v739_v6 = vld [vmem:[%s2938_s18 + $0x320] sm:$0xff]  ;;  %v2368_v24 = vunpack.c.h.bf16 %v2566_v5 }
  0xcf   : > { %v1560_v17 = vadd.f32 %v1559_v12, %v1433_v11  ;;  %v1851_v23 = vadd.f32 %v1850_v14, %v1849_v16  ;;  %v740_v11 = vld [vmem:[%s2938_s18 + $0x328] sm:$0xff] }
  0xd0   : > { %v916_v21 = vpop.permute.xlu1 %915  ;;  %v911_v22 = vpop.permute.xlu0 %910  ;;  %v1868_v16 = vsel %vm1666_vm1, %v740_v11, 0.0 }
  0xd1   : > { %v1561_v27 = vadd.f32 %v1560_v17, %v1434_v18  ;;  %1235 = vperm.xlu1 %2765, %v732_v15   ;;  %1230 = vperm.xlu0 %2764, %v731_v10   ;;  %v1853_v31 = vadd.f32 %v1852_v20, %v1851_v23  ;;  %v1436_v33 = vmul.f32 %v2351_v19, %v911_v22  ;;  %v1866_v10 = vsel %vm1666_vm1, %v739_v6, 0.0  ;;  %v2567_v20 = vld [vmem:[%s2933_s15 + $0x98] sm:$0xff]  }
  0xd2   : > { %v1437_v41 = vmul.f32 %v2352_v28, %v916_v21  ;;  %v2367_v15 = vunpack.c.l.bf16 %v2566_v5  ;;  %v741_v21 = vld [vmem:[%s2938_s18 + $0x330] sm:$0xff]  ;;  %v2372_v39 = vunpack.c.h.bf16 %v2567_v20 }
  0xd3   : > { %v1562_v32 = vadd.f32 %v1561_v27, %v1435_v26  ;;  %v1855_v38 = vadd.f32 %v1854_v29, %v1853_v31  ;;  %v742_v26 = vld [vmem:[%s2938_s18 + $0x338] sm:$0xff] }
  0xd4   : > { %v926_v36 = vpop.permute.xlu1 %925  ;;  %v921_v37 = vpop.permute.xlu0 %920  ;;  %v1872_v31 = vsel %vm1666_vm1, %v742_v26, 0.0 }
  0xd5   : > { %v1563_v42 = vadd.f32 %v1562_v32, %v1436_v33  ;;  %1245 = vperm.xlu1 %2765, %v734_v30   ;;  %1240 = vperm.xlu0 %2764, %v733_v25   ;;  %v1857_v46 = vadd.f32 %v1856_v35, %v1855_v38  ;;  %v1438_v48 = vmul.f32 %v2355_v34, %v921_v37  ;;  %v1870_v25 = vsel %vm1666_vm1, %v741_v21, 0.0  ;;  %v2568_v35 = vld [vmem:[%s2933_s15 + $0xa0] sm:$0xff]  }
  0xd6   : > { %v1439_v56 = vmul.f32 %v2356_v43, %v926_v36  ;;  %v2371_v30 = vunpack.c.l.bf16 %v2567_v20  ;;  %v743_v36 = vld [vmem:[%s2938_s18 + $0x340] sm:$0xff]  ;;  %v2376_v54 = vunpack.c.h.bf16 %v2568_v35 }
  0xd7   : > { %v1564_v47 = vadd.f32 %v1563_v42, %v1437_v41  ;;  %v1859_v53 = vadd.f32 %v1858_v44, %v1857_v46  ;;  %v744_v41 = vld [vmem:[%s2938_s18 + $0x348] sm:$0xff] }
  0xd8   : > { %v936_v51 = vpop.permute.xlu1 %935  ;;  %v931_v52 = vpop.permute.xlu0 %930  ;;  %v1876_v46 = vsel %vm1666_vm1, %v744_v41, 0.0 }
  0xd9   : > { %v1565_v57 = vadd.f32 %v1564_v47, %v1438_v48  ;;  %1255 = vperm.xlu1 %2765, %v736_v45   ;;  %1250 = vperm.xlu0 %2764, %v735_v40   ;;  %v1861_v60 = vadd.f32 %v1860_v50, %v1859_v53  ;;  %v1440_v63 = vmul.f32 %v2359_v49, %v931_v52  ;;  %v1874_v40 = vsel %vm1666_vm1, %v743_v36, 0.0  ;;  %v2569_v50 = vld [vmem:[%s2933_s15 + $0xa8] sm:$0xff]  }
  0xda   : > { %v1441_v7 = vmul.f32 %v2360_v58, %v936_v51  ;;  %v2375_v45 = vunpack.c.l.bf16 %v2568_v35  ;;  %v745_v51 = vld [vmem:[%s2938_s18 + $0x350] sm:$0xff]  ;;  %v2380_v5 = vunpack.c.h.bf16 %v2569_v50 }
  0xdb   : > { %v1566_v62 = vadd.f32 %v1565_v57, %v1439_v56  ;;  %v1863_v4 = vadd.f32 %v1862_v59, %v1861_v60  ;;  %v746_v56 = vld [vmem:[%s2938_s18 + $0x358] sm:$0xff]  ;;  %v2379_v60 = vunpack.c.l.bf16 %v2569_v50 }
  0xdc   : > { %v946_v2 = vpop.permute.xlu1 %945  ;;  %v941_v3 = vpop.permute.xlu0 %940 }
  0xdd   : > { %v1567_v8 = vadd.f32 %v1566_v62, %v1440_v63  ;;  %1265 = vperm.xlu1 %2765, %v738_v61   ;;  %1260 = vperm.xlu0 %2764, %v737_v55   ;;  %v1865_v12 = vadd.f32 %v1864_v1, %v1863_v4  ;;  %v1442_v14 = vmul.f32 %v2363_v0, %v941_v3  ;;  %v1878_v55 = vsel %vm1666_vm1, %v745_v51, 0.0  ;;  %v2570_v1 = vld [vmem:[%s2933_s15 + $0xb0] sm:$0xff]  }
  0xde   : > { %v1443_v22 = vmul.f32 %v2364_v9, %v946_v2  ;;  %v1880_v61 = vsel %vm1666_vm1, %v746_v56, 0.0  ;;  %v747_v2 = vld [vmem:[%s2938_s18 + $0x360] sm:$0xff]  ;;  %v2384_v20 = vunpack.c.h.bf16 %v2570_v1 }
  0xdf   : > { %v1568_v13 = vadd.f32 %v1567_v8, %v1441_v7  ;;  %v1867_v19 = vadd.f32 %v1866_v10, %v1865_v12  ;;  %v748_v7 = vld [vmem:[%s2938_s18 + $0x368] sm:$0xff] }
  0xe0   : > { %v956_v17 = vpop.permute.xlu1 %955  ;;  %v951_v18 = vpop.permute.xlu0 %950  ;;  %v1884_v12 = vsel %vm1666_vm1, %v748_v7, 0.0 }
  0xe1   : > { %v1569_v23 = vadd.f32 %v1568_v13, %v1442_v14  ;;  %1275 = vperm.xlu1 %2765, %v740_v11   ;;  %1270 = vperm.xlu0 %2764, %v739_v6   ;;  %v1869_v27 = vadd.f32 %v1868_v16, %v1867_v19  ;;  %v1444_v29 = vmul.f32 %v2367_v15, %v951_v18  ;;  %v1882_v6 = vsel %vm1666_vm1, %v747_v2, 0.0  ;;  %v2571_v16 = vld [vmem:[%s2933_s15 + $0xb8] sm:$0xff]  }
  0xe2   : > { %v1445_v37 = vmul.f32 %v2368_v24, %v956_v17  ;;  %v2383_v11 = vunpack.c.l.bf16 %v2570_v1  ;;  %v749_v17 = vld [vmem:[%s2938_s18 + $0x370] sm:$0xff]  ;;  %v2388_v35 = vunpack.c.h.bf16 %v2571_v16 }
  0xe3   : > { %v1570_v28 = vadd.f32 %v1569_v23, %v1443_v22  ;;  %v1871_v34 = vadd.f32 %v1870_v25, %v1869_v27  ;;  %v750_v22 = vld [vmem:[%s2938_s18 + $0x378] sm:$0xff] }
  0xe4   : > { %v966_v32 = vpop.permute.xlu1 %965  ;;  %v961_v33 = vpop.permute.xlu0 %960  ;;  %v1888_v27 = vsel %vm1666_vm1, %v750_v22, 0.0 }
  0xe5   : > { %v1571_v38 = vadd.f32 %v1570_v28, %v1444_v29  ;;  %1285 = vperm.xlu1 %2765, %v742_v26   ;;  %1280 = vperm.xlu0 %2764, %v741_v21   ;;  %v1873_v42 = vadd.f32 %v1872_v31, %v1871_v34  ;;  %v1446_v44 = vmul.f32 %v2371_v30, %v961_v33  ;;  %v1886_v21 = vsel %vm1666_vm1, %v749_v17, 0.0  ;;  %v2572_v31 = vld [vmem:[%s2933_s15 + $0xc0] sm:$0xff]  }
  0xe6   : > { %v1447_v52 = vmul.f32 %v2372_v39, %v966_v32  ;;  %v2387_v26 = vunpack.c.l.bf16 %v2571_v16  ;;  %v751_v32 = vld [vmem:[%s2938_s18 + $0x380] sm:$0xff]  ;;  %v2392_v50 = vunpack.c.h.bf16 %v2572_v31 }
  0xe7   : > { %v1572_v43 = vadd.f32 %v1571_v38, %v1445_v37  ;;  %v1875_v49 = vadd.f32 %v1874_v40, %v1873_v42  ;;  %v752_v37 = vld [vmem:[%s2938_s18 + $0x388] sm:$0xff] }
  0xe8   : > { %v976_v47 = vpop.permute.xlu1 %975  ;;  %v971_v48 = vpop.permute.xlu0 %970  ;;  %v1892_v42 = vsel %vm1666_vm1, %v752_v37, 0.0 }
  0xe9   : > { %v1573_v53 = vadd.f32 %v1572_v43, %v1446_v44  ;;  %1295 = vperm.xlu1 %2765, %v744_v41   ;;  %1290 = vperm.xlu0 %2764, %v743_v36   ;;  %v1877_v57 = vadd.f32 %v1876_v46, %v1875_v49  ;;  %v1448_v59 = vmul.f32 %v2375_v45, %v971_v48  ;;  %v1890_v36 = vsel %vm1666_vm1, %v751_v32, 0.0  ;;  %v2573_v46 = vld [vmem:[%s2933_s15 + $0xc8] sm:$0xff]  }
  0xea   : > { %v1449_v3 = vmul.f32 %v2376_v54, %v976_v47  ;;  %v2391_v41 = vunpack.c.l.bf16 %v2572_v31  ;;  %v753_v47 = vld [vmem:[%s2938_s18 + $0x390] sm:$0xff]  ;;  %v2396_v1 = vunpack.c.h.bf16 %v2573_v46 }
  0xeb   : > { %v1574_v58 = vadd.f32 %v1573_v53, %v1447_v52  ;;  %v1879_v0 = vadd.f32 %v1878_v55, %v1877_v57  ;;  %v754_v52 = vld [vmem:[%s2938_s18 + $0x398] sm:$0xff] }
  0xec   : > { %v986_v62 = vpop.permute.xlu1 %985  ;;  %v981_v63 = vpop.permute.xlu0 %980  ;;  %v1896_v57 = vsel %vm1666_vm1, %v754_v52, 0.0 }
  0xed   : > { %v1575_v4 = vadd.f32 %v1574_v58, %v1448_v59  ;;  %1305 = vperm.xlu1 %2765, %v746_v56   ;;  %1300 = vperm.xlu0 %2764, %v745_v51   ;;  %v1881_v8 = vadd.f32 %v1880_v61, %v1879_v0  ;;  %v1450_v10 = vmul.f32 %v2379_v60, %v981_v63  ;;  %v1894_v51 = vsel %vm1666_vm1, %v753_v47, 0.0  ;;  %v2574_v61 = vld [vmem:[%s2933_s15 + $0xd0] sm:$0xff]  }
  0xee   : > { %v1451_v18 = vmul.f32 %v2380_v5, %v986_v62  ;;  %v2395_v56 = vunpack.c.l.bf16 %v2573_v46  ;;  %v755_v62 = vld [vmem:[%s2938_s18 + $0x3a0] sm:$0xff]  ;;  %v2400_v16 = vunpack.c.h.bf16 %v2574_v61 }
  0xef   : > { %v1576_v9 = vadd.f32 %v1575_v4, %v1449_v3  ;;  %v1883_v15 = vadd.f32 %v1882_v6, %v1881_v8  ;;  %v756_v3 = vld [vmem:[%s2938_s18 + $0x3a8] sm:$0xff] }
  0xf0   : > { %v996_v13 = vpop.permute.xlu1 %995  ;;  %v991_v14 = vpop.permute.xlu0 %990  ;;  %v1900_v8 = vsel %vm1666_vm1, %v756_v3, 0.0 }
  0xf1   : > { %v1577_v19 = vadd.f32 %v1576_v9, %v1450_v10  ;;  %1315 = vperm.xlu1 %2765, %v748_v7   ;;  %1310 = vperm.xlu0 %2764, %v747_v2   ;;  %v1885_v23 = vadd.f32 %v1884_v12, %v1883_v15  ;;  %v1452_v25 = vmul.f32 %v2383_v11, %v991_v14  ;;  %v1898_v2 = vsel %vm1666_vm1, %v755_v62, 0.0  ;;  %v2575_v12 = vld [vmem:[%s2933_s15 + $0xd8] sm:$0xff]  }
  0xf2   : > { %v1453_v33 = vmul.f32 %v2384_v20, %v996_v13  ;;  %v2399_v7 = vunpack.c.l.bf16 %v2574_v61  ;;  %v757_v13 = vld [vmem:[%s2938_s18 + $0x3b0] sm:$0xff]  ;;  %v2404_v31 = vunpack.c.h.bf16 %v2575_v12 }
  0xf3   : > { %v1578_v24 = vadd.f32 %v1577_v19, %v1451_v18  ;;  %v1887_v30 = vadd.f32 %v1886_v21, %v1885_v23  ;;  %v758_v18 = vld [vmem:[%s2938_s18 + $0x3b8] sm:$0xff] }
  0xf4   : > { %v1006_v28 = vpop.permute.xlu1 %1005  ;;  %v1001_v29 = vpop.permute.xlu0 %1000  ;;  %v1904_v23 = vsel %vm1666_vm1, %v758_v18, 0.0 }
  0xf5   : > { %v1579_v34 = vadd.f32 %v1578_v24, %v1452_v25  ;;  %1325 = vperm.xlu1 %2765, %v750_v22   ;;  %1320 = vperm.xlu0 %2764, %v749_v17   ;;  %v1889_v38 = vadd.f32 %v1888_v27, %v1887_v30  ;;  %v1454_v40 = vmul.f32 %v2387_v26, %v1001_v29  ;;  %v1902_v17 = vsel %vm1666_vm1, %v757_v13, 0.0  ;;  %v2576_v27 = vld [vmem:[%s2933_s15 + $0xe0] sm:$0xff]  }
  0xf6   : > { %v1455_v48 = vmul.f32 %v2388_v35, %v1006_v28  ;;  %v2403_v22 = vunpack.c.l.bf16 %v2575_v12  ;;  %v759_v28 = vld [vmem:[%s2938_s18 + $0x3c0] sm:$0xff]  ;;  %v2408_v46 = vunpack.c.h.bf16 %v2576_v27 }
  0xf7   : > { %v1580_v39 = vadd.f32 %v1579_v34, %v1453_v33  ;;  %v1891_v45 = vadd.f32 %v1890_v36, %v1889_v38  ;;  %v760_v33 = vld [vmem:[%s2938_s18 + $0x3c8] sm:$0xff] }
  0xf8   : > { %v1016_v43 = vpop.permute.xlu1 %1015  ;;  %v1011_v44 = vpop.permute.xlu0 %1010  ;;  %v1908_v38 = vsel %vm1666_vm1, %v760_v33, 0.0 }
  0xf9   : > { %v1581_v49 = vadd.f32 %v1580_v39, %v1454_v40  ;;  %1335 = vperm.xlu1 %2765, %v752_v37   ;;  %1330 = vperm.xlu0 %2764, %v751_v32   ;;  %v1893_v53 = vadd.f32 %v1892_v42, %v1891_v45  ;;  %v1456_v55 = vmul.f32 %v2391_v41, %v1011_v44  ;;  %v1906_v32 = vsel %vm1666_vm1, %v759_v28, 0.0  ;;  %v2577_v42 = vld [vmem:[%s2933_s15 + $0xe8] sm:$0xff]  }
  0xfa   : > { %v1457_v63 = vmul.f32 %v2392_v50, %v1016_v43  ;;  %v2407_v37 = vunpack.c.l.bf16 %v2576_v27  ;;  %v761_v43 = vld [vmem:[%s2938_s18 + $0x3d0] sm:$0xff]  ;;  %v2412_v61 = vunpack.c.h.bf16 %v2577_v42  ;;  %v1665_v27 = vld [vmem:[#allocation3] sm:$0xff] }
  0xfb   : > { %v1582_v54 = vadd.f32 %v1581_v49, %v1455_v48  ;;  %v1895_v60 = vadd.f32 %v1894_v51, %v1893_v53  ;;  %v762_v48 = vld [vmem:[%s2938_s18 + $0x3d8] sm:$0xff] }
  0xfc   : > { %v1026_v58 = vpop.permute.xlu1 %1025  ;;  %v1021_v59 = vpop.permute.xlu0 %1020  ;;  %v1912_v53 = vsel %vm1666_vm1, %v762_v48, 0.0 }
  0xfd   : > { %v1583_v0 = vadd.f32 %v1582_v54, %v1456_v55  ;;  %1345 = vperm.xlu1 %2765, %v754_v52   ;;  %1340 = vperm.xlu0 %2764, %v753_v47   ;;  %v1897_v4 = vadd.f32 %v1896_v57, %v1895_v60  ;;  %v1458_v6 = vmul.f32 %v2395_v56, %v1021_v59  ;;  %v1910_v47 = vsel %vm1666_vm1, %v761_v43, 0.0  ;;  %v2578_v57 = vld [vmem:[%s2933_s15 + $0xf0] sm:$0xff]  }
  0xfe   : > { %v1459_v14 = vmul.f32 %v2396_v1, %v1026_v58  ;;  %v2411_v52 = vunpack.c.l.bf16 %v2577_v42  ;;  %v763_v58 = vld [vmem:[%s2938_s18 + $0x3e0] sm:$0xff]  ;;  %v2416_v12 = vunpack.c.h.bf16 %v2578_v57 }
  0xff   : > { %v1584_v5 = vadd.f32 %v1583_v0, %v1457_v63  ;;  %v1899_v11 = vadd.f32 %v1898_v2, %v1897_v4  ;;  %v764_v63 = vld [vmem:[%s2938_s18 + $0x3e8] sm:$0xff] }
 0x100   : > { %v1036_v9 = vpop.permute.xlu1 %1035  ;;  %v1031_v10 = vpop.permute.xlu0 %1030  ;;  %v1916_v4 = vsel %vm1666_vm1, %v764_v63, 0.0 }
 0x101   : > { %v1585_v15 = vadd.f32 %v1584_v5, %v1458_v6  ;;  %1355 = vperm.xlu1 %2765, %v756_v3   ;;  %1350 = vperm.xlu0 %2764, %v755_v62   ;;  %v1901_v19 = vadd.f32 %v1900_v8, %v1899_v11  ;;  %v1460_v21 = vmul.f32 %v2399_v7, %v1031_v10  ;;  %v1914_v62 = vsel %vm1666_vm1, %v763_v58, 0.0  ;;  %v2579_v8 = vld [vmem:[%s2933_s15 + $0xf8] sm:$0xff]  }
 0x102   : > { %v1461_v29 = vmul.f32 %v2400_v16, %v1036_v9  ;;  %v2415_v3 = vunpack.c.l.bf16 %v2578_v57  ;;  %v765_v9 = vld [vmem:[%s2938_s18 + $0x3f0] sm:$0xff] }
 0x103   : > { %v1586_v20 = vadd.f32 %v1585_v15, %v1459_v14  ;;  %v1903_v26 = vadd.f32 %v1902_v17, %v1901_v19  ;;  %v766_v14 = vld [vmem:[%s2938_s18 + $0x3f8] sm:$0xff] }
 0x104   : > { %v1046_v24 = vpop.permute.xlu1 %1045  ;;  %v1041_v25 = vpop.permute.xlu0 %1040  ;;  %v1920_v19 = vsel %vm1666_vm1, %v766_v14, 0.0 }
 0x105   : > { %v1587_v30 = vadd.f32 %v1586_v20, %v1460_v21  ;;  %1365 = vperm.xlu1 %2765, %v758_v18   ;;  %1360 = vperm.xlu0 %2764, %v757_v13   ;;  %v1905_v34 = vadd.f32 %v1904_v23, %v1903_v26  ;;  %v1462_v36 = vmul.f32 %v2403_v22, %v1041_v25  ;;  %v1918_v13 = vsel %vm1666_vm1, %v765_v9, 0.0  ;;  %v2580_v23 = vld [vmem:[%s2933_s15 + $0x100] sm:$0xff]  }
 0x106   : > { %v1463_v44 = vmul.f32 %v2404_v31, %v1046_v24  ;;  %v2419_v18 = vunpack.c.l.bf16 %v2579_v8  ;;  %v2420_v26 = vunpack.c.h.bf16 %v2579_v8  ;;  %v2423_v31 = vunpack.c.l.bf16 %v2580_v23 }
 0x107   : > { %v1588_v35 = vadd.f32 %v1587_v30, %v1461_v29  ;;  %v1907_v41 = vadd.f32 %v1906_v32, %v1905_v34 }
 0x108   : > { %v1056_v39 = vpop.permute.xlu1 %1055  ;;  %v1051_v40 = vpop.permute.xlu0 %1050 }
 0x109   : > { %v1589_v45 = vadd.f32 %v1588_v35, %v1462_v36  ;;  %1375 = vperm.xlu1 %2765, %v760_v33   ;;  %1370 = vperm.xlu0 %2764, %v759_v28   ;;  %v1909_v49 = vadd.f32 %v1908_v38, %v1907_v41  ;;  %v1464_v51 = vmul.f32 %v2407_v37, %v1051_v40  ;;  %v2581_v35 = vld [vmem:[%s2933_s15 + $0x108] sm:$0xff]   ;;  %v2424_v38 = vunpack.c.h.bf16 %v2580_v23 }
 0x10a   : > { %v1465_v59 = vmul.f32 %v2408_v46, %v1056_v39  ;;  %v2427_v41 = vunpack.c.l.bf16 %v2581_v35 }
 0x10b   : > { %v1590_v50 = vadd.f32 %v1589_v45, %v1463_v44  ;;  %v1911_v56 = vadd.f32 %v1910_v47, %v1909_v49  ;;  %v2582_v44 = vld [vmem:[%s2933_s15 + $0x110] sm:$0xff]   ;;  %v2428_v47 = vunpack.c.h.bf16 %v2581_v35 }
 0x10c   : > { %v1066_v54 = vpop.permute.xlu1 %1065  ;;  %v1061_v55 = vpop.permute.xlu0 %1060 }
 0x10d   : > { %v1591_v60 = vadd.f32 %v1590_v50, %v1464_v51  ;;  %1385 = vperm.xlu1 %2765, %v762_v48   ;;  %1380 = vperm.xlu0 %2764, %v761_v43   ;;  %v1913_v0 = vadd.f32 %v1912_v53, %v1911_v56  ;;  %v1466_v2 = vmul.f32 %v2411_v52, %v1061_v55  ;;  %v2431_v50 = vunpack.c.l.bf16 %v2582_v44  ;;  %v2583_v53 = vld [vmem:[%s2933_s15 + $0x118] sm:$0xff]  }
 0x10e   : > { %v1467_v10 = vmul.f32 %v2412_v61, %v1066_v54  ;;  %v2432_v56 = vunpack.c.h.bf16 %v2582_v44 }
 0x10f   : > { %v1592_v1 = vadd.f32 %v1591_v60, %v1465_v59  ;;  %v1915_v7 = vadd.f32 %v1914_v62, %v1913_v0  ;;  %v2435_v59 = vunpack.c.l.bf16 %v2583_v53  ;;  %v2584_v62 = vld [vmem:[%s2933_s15 + $0x120] sm:$0xff]  }
 0x110   : > { %v1076_v5 = vpop.permute.xlu1 %1075  ;;  %v1071_v6 = vpop.permute.xlu0 %1070 }
 0x111   : > { %v1593_v11 = vadd.f32 %v1592_v1, %v1466_v2  ;;  %1395 = vperm.xlu1 %2765, %v764_v63   ;;  %1390 = vperm.xlu0 %2764, %v763_v58   ;;  %v1917_v15 = vadd.f32 %v1916_v4, %v1915_v7  ;;  %v1468_v17 = vmul.f32 %v2415_v3, %v1071_v6  ;;  %v2436_v1 = vunpack.c.h.bf16 %v2583_v53  ;;  %v2585_v7 = vld [vmem:[%s2933_s15 + $0x128] sm:$0xff]  }
 0x112   : > { %v1469_v24 = vmul.f32 %v2416_v12, %v1076_v5  ;;  %v2439_v4 = vunpack.c.l.bf16 %v2584_v62 }
 0x113   : > { %v1594_v16 = vadd.f32 %v1593_v11, %v1467_v10  ;;  %v1919_v22 = vadd.f32 %v1918_v13, %v1917_v15  ;;  %v2440_v10 = vunpack.c.h.bf16 %v2584_v62  ;;  %v2443_v13 = vunpack.c.l.bf16 %v2585_v7 }
 0x114   : > { %v1086_v20 = vpop.permute.xlu1 %1085  ;;  %v1081_v21 = vpop.permute.xlu0 %1080 }
 0x115   : > { %v1595_v25 = vadd.f32 %v1594_v16, %v1468_v17  ;;  %1405 = vperm.xlu1 %2765, %v766_v14   ;;  %1400 = vperm.xlu0 %2764, %v765_v9   ;;  %v1921_v28 = vadd.f32 %v1920_v19, %v1919_v22  ;;  %v1470_v30 = vmul.f32 %v2419_v18, %v1081_v21  ;;  %v2586_v16 = vld [vmem:[%s2933_s15 + $0x130] sm:$0xff]   ;;  %v2444_v19 = vunpack.c.h.bf16 %v2585_v7 }
 0x116   : > { %v1471_v36 = vmul.f32 %v2420_v26, %v1086_v20  ;;  %v2447_v22 = vunpack.c.l.bf16 %v2586_v16 }
 0x117   : > { %v1596_v29 = vadd.f32 %v1595_v25, %v1469_v24  ;;  %v1922_v32 = vadd.f32 %v1921_v28, %v1665_v27  ;;  %v2587_v25 = vld [vmem:[%s2933_s15 + $0x138] sm:$0xff]   ;;  %v2448_v28 = vunpack.c.h.bf16 %v2586_v16 }
 0x118   : > { %v1096_v33 = vpop.permute.xlu1 %1095  ;;  %v1091_v34 = vpop.permute.xlu0 %1090 }
 0x119   : > { %v1597_v37 = vadd.f32 %v1596_v29, %v1470_v30  ;;  %1923 = vst.msk [vmem:[#allocation3] sm:$0xff] %vm1666_vm1, %v1922_v32  ;;  %v1472_v40 = vmul.f32 %v2423_v31, %v1091_v34  ;;  %v1473_v45 = vmul.f32 %v2424_v38, %v1096_v33  ;;  %v2451_v31 = vunpack.c.l.bf16 %v2587_v25  ;;  %v2588_v34 = vld [vmem:[%s2933_s15 + $0x140] sm:$0xff]  }
 0x11b   : > { %v1598_v39 = vadd.f32 %v1597_v37, %v1471_v36  ;;  %v2452_v37 = vunpack.c.h.bf16 %v2587_v25 }
 0x11c   : > { %v1106_v42 = vpop.permute.xlu1 %1105  ;;  %v1101_v43 = vpop.permute.xlu0 %1100 }
 0x11d   : > { %v1599_v46 = vadd.f32 %v1598_v39, %v1472_v40  ;;  %v1474_v49 = vmul.f32 %v2427_v41, %v1101_v43  ;;  %v1475_v54 = vmul.f32 %v2428_v47, %v1106_v42  ;;  %v2455_v40 = vunpack.c.l.bf16 %v2588_v34  ;;  %v2589_v43 = vld [vmem:[%s2933_s15 + $0x148] sm:$0xff]  }
 0x11f   : > { %v1600_v48 = vadd.f32 %v1599_v46, %v1473_v45  ;;  %v2456_v46 = vunpack.c.h.bf16 %v2588_v34 }
 0x120   : > { %v1116_v51 = vpop.permute.xlu1 %1115  ;;  %v1111_v52 = vpop.permute.xlu0 %1110 }
 0x121   : > { %v1601_v55 = vadd.f32 %v1600_v48, %v1474_v49  ;;  %v1476_v57 = vmul.f32 %v2431_v50, %v1111_v52  ;;  %v1477_v63 = vmul.f32 %v2432_v56, %v1116_v51  ;;  %v2459_v49 = vunpack.c.l.bf16 %v2589_v43  ;;  %v2590_v52 = vld [vmem:[%s2933_s15 + $0x150] sm:$0xff]  }
 0x123   : > { %v1602_v58 = vadd.f32 %v1601_v55, %v1475_v54  ;;  %v2460_v55 = vunpack.c.h.bf16 %v2589_v43 }
 0x124   : > { %v1126_v60 = vpop.permute.xlu1 %1125  ;;  %v1121_v61 = vpop.permute.xlu0 %1120 }
 0x125   : > { %v1603_v0 = vadd.f32 %v1602_v58, %v1476_v57  ;;  %v1478_v2 = vmul.f32 %v2435_v59, %v1121_v61  ;;  %v1479_v8 = vmul.f32 %v2436_v1, %v1126_v60  ;;  %v2463_v58 = vunpack.c.l.bf16 %v2590_v52  ;;  %v2591_v61 = vld [vmem:[%s2933_s15 + $0x158] sm:$0xff]  }
 0x127   : > { %v1604_v3 = vadd.f32 %v1603_v0, %v1477_v63  ;;  %v2464_v0 = vunpack.c.h.bf16 %v2590_v52 }
 0x128   : > { %v1136_v5 = vpop.permute.xlu1 %1135  ;;  %v1131_v6 = vpop.permute.xlu0 %1130 }
 0x129   : > { %v1605_v9 = vadd.f32 %v1604_v3, %v1478_v2  ;;  %v1480_v11 = vmul.f32 %v2439_v4, %v1131_v6  ;;  %v1481_v17 = vmul.f32 %v2440_v10, %v1136_v5  ;;  %v2467_v3 = vunpack.c.l.bf16 %v2591_v61  ;;  %v2592_v6 = vld [vmem:[%s2933_s15 + $0x160] sm:$0xff]  }
 0x12b   : > { %v1606_v12 = vadd.f32 %v1605_v9, %v1479_v8  ;;  %v2468_v9 = vunpack.c.h.bf16 %v2591_v61 }
 0x12c   : > { %v1146_v14 = vpop.permute.xlu1 %1145  ;;  %v1141_v15 = vpop.permute.xlu0 %1140 }
 0x12d   : > { %v1607_v18 = vadd.f32 %v1606_v12, %v1480_v11  ;;  %v1482_v20 = vmul.f32 %v2443_v13, %v1141_v15  ;;  %v1483_v26 = vmul.f32 %v2444_v19, %v1146_v14  ;;  %v2471_v12 = vunpack.c.l.bf16 %v2592_v6  ;;  %v2593_v15 = vld [vmem:[%s2933_s15 + $0x168] sm:$0xff]  }
 0x12f   : > { %v1608_v21 = vadd.f32 %v1607_v18, %v1481_v17  ;;  %v2472_v18 = vunpack.c.h.bf16 %v2592_v6 }
 0x130   : > { %v1156_v23 = vpop.permute.xlu1 %1155  ;;  %v1151_v24 = vpop.permute.xlu0 %1150 }
 0x131   : > { %v1609_v27 = vadd.f32 %v1608_v21, %v1482_v20  ;;  %v1484_v29 = vmul.f32 %v2447_v22, %v1151_v24  ;;  %v1485_v35 = vmul.f32 %v2448_v28, %v1156_v23  ;;  %v2475_v21 = vunpack.c.l.bf16 %v2593_v15  ;;  %v2594_v24 = vld [vmem:[%s2933_s15 + $0x170] sm:$0xff]  }
 0x133   : > { %v1610_v30 = vadd.f32 %v1609_v27, %v1483_v26  ;;  %v2476_v27 = vunpack.c.h.bf16 %v2593_v15 }
 0x134   : > { %v1166_v32 = vpop.permute.xlu1 %1165  ;;  %v1161_v33 = vpop.permute.xlu0 %1160 }
 0x135   : > { %v1611_v36 = vadd.f32 %v1610_v30, %v1484_v29  ;;  %v1486_v38 = vmul.f32 %v2451_v31, %v1161_v33  ;;  %v1487_v44 = vmul.f32 %v2452_v37, %v1166_v32  ;;  %v2479_v30 = vunpack.c.l.bf16 %v2594_v24  ;;  %v2595_v33 = vld [vmem:[%s2933_s15 + $0x178] sm:$0xff]  }
 0x137   : > { %v1612_v39 = vadd.f32 %v1611_v36, %v1485_v35  ;;  %v2480_v36 = vunpack.c.h.bf16 %v2594_v24 }
 0x138   : > { %v1176_v41 = vpop.permute.xlu1 %1175  ;;  %v1171_v42 = vpop.permute.xlu0 %1170 }
 0x139   : > { %v1613_v45 = vadd.f32 %v1612_v39, %v1486_v38  ;;  %v1488_v47 = vmul.f32 %v2455_v40, %v1171_v42  ;;  %v1489_v53 = vmul.f32 %v2456_v46, %v1176_v41  ;;  %v2483_v39 = vunpack.c.l.bf16 %v2595_v33  ;;  %v2596_v42 = vld [vmem:[%s2933_s15 + $0x180] sm:$0xff]  }
 0x13b   : > { %v1614_v48 = vadd.f32 %v1613_v45, %v1487_v44  ;;  %v2484_v45 = vunpack.c.h.bf16 %v2595_v33 }
 0x13c   : > { %v1186_v50 = vpop.permute.xlu1 %1185  ;;  %v1181_v51 = vpop.permute.xlu0 %1180 }
 0x13d   : > { %v1615_v54 = vadd.f32 %v1614_v48, %v1488_v47  ;;  %v1490_v56 = vmul.f32 %v2459_v49, %v1181_v51  ;;  %v1491_v62 = vmul.f32 %v2460_v55, %v1186_v50  ;;  %v2487_v48 = vunpack.c.l.bf16 %v2596_v42  ;;  %v2597_v51 = vld [vmem:[%s2933_s15 + $0x188] sm:$0xff]  }
 0x13f   : > { %v1616_v57 = vadd.f32 %v1615_v54, %v1489_v53  ;;  %v2488_v54 = vunpack.c.h.bf16 %v2596_v42 }
 0x140   : > { %v1196_v59 = vpop.permute.xlu1 %1195  ;;  %v1191_v60 = vpop.permute.xlu0 %1190 }
 0x141   : > { %v1617_v63 = vadd.f32 %v1616_v57, %v1490_v56  ;;  %v1492_v1 = vmul.f32 %v2463_v58, %v1191_v60  ;;  %v1493_v7 = vmul.f32 %v2464_v0, %v1196_v59  ;;  %v2491_v57 = vunpack.c.l.bf16 %v2597_v51  ;;  %v2598_v60 = vld [vmem:[%s2933_s15 + $0x190] sm:$0xff]  }
 0x143   : > { %v1618_v2 = vadd.f32 %v1617_v63, %v1491_v62  ;;  %v2492_v63 = vunpack.c.h.bf16 %v2597_v51 }
 0x144   : > { %v1206_v4 = vpop.permute.xlu1 %1205  ;;  %v1201_v5 = vpop.permute.xlu0 %1200 }
 0x145   : > { %v1619_v8 = vadd.f32 %v1618_v2, %v1492_v1  ;;  %v1494_v10 = vmul.f32 %v2467_v3, %v1201_v5  ;;  %v1495_v16 = vmul.f32 %v2468_v9, %v1206_v4  ;;  %v2495_v2 = vunpack.c.l.bf16 %v2598_v60  ;;  %v2599_v5 = vld [vmem:[%s2933_s15 + $0x198] sm:$0xff]  }
 0x147   : > { %v1620_v11 = vadd.f32 %v1619_v8, %v1493_v7  ;;  %v2496_v8 = vunpack.c.h.bf16 %v2598_v60 }
 0x148   : > { %v1216_v13 = vpop.permute.xlu1 %1215  ;;  %v1211_v14 = vpop.permute.xlu0 %1210 }
 0x149   : > { %v1621_v17 = vadd.f32 %v1620_v11, %v1494_v10  ;;  %v1496_v19 = vmul.f32 %v2471_v12, %v1211_v14  ;;  %v1497_v25 = vmul.f32 %v2472_v18, %v1216_v13  ;;  %v2499_v11 = vunpack.c.l.bf16 %v2599_v5  ;;  %v2600_v14 = vld [vmem:[%s2933_s15 + $0x1a0] sm:$0xff]  }
 0x14b   : > { %v1622_v20 = vadd.f32 %v1621_v17, %v1495_v16  ;;  %v2500_v17 = vunpack.c.h.bf16 %v2599_v5 }
 0x14c   : > { %v1226_v22 = vpop.permute.xlu1 %1225  ;;  %v1221_v23 = vpop.permute.xlu0 %1220 }
 0x14d   : > { %v1623_v26 = vadd.f32 %v1622_v20, %v1496_v19  ;;  %v1498_v28 = vmul.f32 %v2475_v21, %v1221_v23  ;;  %v1499_v34 = vmul.f32 %v2476_v27, %v1226_v22  ;;  %v2503_v20 = vunpack.c.l.bf16 %v2600_v14  ;;  %v2601_v23 = vld [vmem:[%s2933_s15 + $0x1a8] sm:$0xff]  }
 0x14f   : > { %v1624_v29 = vadd.f32 %v1623_v26, %v1497_v25  ;;  %v2504_v26 = vunpack.c.h.bf16 %v2600_v14 }
 0x150   : > { %v1236_v31 = vpop.permute.xlu1 %1235  ;;  %v1231_v32 = vpop.permute.xlu0 %1230 }
 0x151   : > { %v1625_v35 = vadd.f32 %v1624_v29, %v1498_v28  ;;  %v1500_v37 = vmul.f32 %v2479_v30, %v1231_v32  ;;  %v1501_v43 = vmul.f32 %v2480_v36, %v1236_v31  ;;  %v2507_v29 = vunpack.c.l.bf16 %v2601_v23  ;;  %v2602_v32 = vld [vmem:[%s2933_s15 + $0x1b0] sm:$0xff]  }
 0x153   : > { %v1626_v38 = vadd.f32 %v1625_v35, %v1499_v34  ;;  %v2508_v35 = vunpack.c.h.bf16 %v2601_v23 }
 0x154   : > { %v1246_v40 = vpop.permute.xlu1 %1245  ;;  %v1241_v41 = vpop.permute.xlu0 %1240 }
 0x155   : > { %v1627_v44 = vadd.f32 %v1626_v38, %v1500_v37  ;;  %v1502_v46 = vmul.f32 %v2483_v39, %v1241_v41  ;;  %v1503_v52 = vmul.f32 %v2484_v45, %v1246_v40  ;;  %v2511_v38 = vunpack.c.l.bf16 %v2602_v32  ;;  %v2603_v41 = vld [vmem:[%s2933_s15 + $0x1b8] sm:$0xff]  }
 0x157   : > { %v1628_v47 = vadd.f32 %v1627_v44, %v1501_v43  ;;  %v2512_v44 = vunpack.c.h.bf16 %v2602_v32 }
 0x158   : > { %v1256_v49 = vpop.permute.xlu1 %1255  ;;  %v1251_v50 = vpop.permute.xlu0 %1250 }
 0x159   : > { %v1629_v53 = vadd.f32 %v1628_v47, %v1502_v46  ;;  %v1504_v55 = vmul.f32 %v2487_v48, %v1251_v50  ;;  %v1505_v61 = vmul.f32 %v2488_v54, %v1256_v49  ;;  %v2515_v47 = vunpack.c.l.bf16 %v2603_v41  ;;  %v2604_v50 = vld [vmem:[%s2933_s15 + $0x1c0] sm:$0xff]  }
 0x15b   : > { %v1630_v56 = vadd.f32 %v1629_v53, %v1503_v52  ;;  %v2516_v53 = vunpack.c.h.bf16 %v2603_v41 }
 0x15c   : > { %v1266_v58 = vpop.permute.xlu1 %1265  ;;  %v1261_v59 = vpop.permute.xlu0 %1260 }
 0x15d   : > { %v1631_v62 = vadd.f32 %v1630_v56, %v1504_v55  ;;  %v1506_v0 = vmul.f32 %v2491_v57, %v1261_v59  ;;  %v1507_v6 = vmul.f32 %v2492_v63, %v1266_v58  ;;  %v2519_v56 = vunpack.c.l.bf16 %v2604_v50  ;;  %v2605_v59 = vld [vmem:[%s2933_s15 + $0x1c8] sm:$0xff]  }
 0x15f   : > { %v1632_v1 = vadd.f32 %v1631_v62, %v1505_v61  ;;  %v2520_v62 = vunpack.c.h.bf16 %v2604_v50 }
 0x160   : > { %v1276_v3 = vpop.permute.xlu1 %1275  ;;  %v1271_v4 = vpop.permute.xlu0 %1270 }
 0x161   : > { %v1633_v7 = vadd.f32 %v1632_v1, %v1506_v0  ;;  %v1508_v9 = vmul.f32 %v2495_v2, %v1271_v4  ;;  %v1509_v15 = vmul.f32 %v2496_v8, %v1276_v3  ;;  %v2523_v1 = vunpack.c.l.bf16 %v2605_v59  ;;  %v2606_v4 = vld [vmem:[%s2933_s15 + $0x1d0] sm:$0xff]  }
 0x163   : > { %v1634_v10 = vadd.f32 %v1633_v7, %v1507_v6  ;;  %v2524_v7 = vunpack.c.h.bf16 %v2605_v59 }
 0x164   : > { %v1286_v12 = vpop.permute.xlu1 %1285  ;;  %v1281_v13 = vpop.permute.xlu0 %1280 }
 0x165   : > { %v1635_v16 = vadd.f32 %v1634_v10, %v1508_v9  ;;  %v1510_v18 = vmul.f32 %v2499_v11, %v1281_v13  ;;  %v1511_v24 = vmul.f32 %v2500_v17, %v1286_v12  ;;  %v2527_v10 = vunpack.c.l.bf16 %v2606_v4  ;;  %v2607_v13 = vld [vmem:[%s2933_s15 + $0x1d8] sm:$0xff]  }
 0x167   : > { %v1636_v19 = vadd.f32 %v1635_v16, %v1509_v15  ;;  %v2528_v16 = vunpack.c.h.bf16 %v2606_v4  ;;  %v1928_v4 = vld [vmem:[#allocation3] sm:$0xff] (!%p2285_p6) }
 0x168   : > { %v1296_v21 = vpop.permute.xlu1 %1295  ;;  %v1291_v22 = vpop.permute.xlu0 %1290 }
 0x169   : > { %v1637_v25 = vadd.f32 %v1636_v19, %v1510_v18  ;;  %v1512_v27 = vmul.f32 %v2503_v20, %v1291_v22  ;;  %v1513_v33 = vmul.f32 %v2504_v26, %v1296_v21  ;;  %v2531_v19 = vunpack.c.l.bf16 %v2607_v13  ;;  %v2608_v22 = vld [vmem:[%s2933_s15 + $0x1e0] sm:$0xff]  }
 0x16b   : > { %v1638_v28 = vadd.f32 %v1637_v25, %v1511_v24  ;;  %v2532_v25 = vunpack.c.h.bf16 %v2607_v13 }
 0x16c   : > { %v1306_v30 = vpop.permute.xlu1 %1305  ;;  %v1301_v31 = vpop.permute.xlu0 %1300 }
 0x16d   : > { %v1639_v34 = vadd.f32 %v1638_v28, %v1512_v27  ;;  %v1514_v36 = vmul.f32 %v2507_v29, %v1301_v31  ;;  %v1515_v42 = vmul.f32 %v2508_v35, %v1306_v30  ;;  %v2535_v28 = vunpack.c.l.bf16 %v2608_v22  ;;  %v2609_v31 = vld [vmem:[%s2933_s15 + $0x1e8] sm:$0xff]  }
 0x16f   : > { %v1640_v37 = vadd.f32 %v1639_v34, %v1513_v33  ;;  %v2536_v34 = vunpack.c.h.bf16 %v2608_v22  ;;  %v1946_v22 = vld [vmem:[%s3486_s2 + $0x40] sm:$0xff] (!%p2285_p6) }
 0x170   : > { %v1316_v39 = vpop.permute.xlu1 %1315  ;;  %v1311_v40 = vpop.permute.xlu0 %1310 }
 0x171   : > { %v1641_v43 = vadd.f32 %v1640_v37, %v1514_v36  ;;  %v1516_v45 = vmul.f32 %v2511_v38, %v1311_v40  ;;  %v1517_v51 = vmul.f32 %v2512_v44, %v1316_v39  ;;  %v2539_v37 = vunpack.c.l.bf16 %v2609_v31  ;;  %v2610_v40 = vld [vmem:[%s2933_s15 + $0x1f0] sm:$0xff]  }
 0x173   : > { %v1642_v46 = vadd.f32 %v1641_v43, %v1515_v42  ;;  %v2540_v43 = vunpack.c.h.bf16 %v2609_v31  ;;  %v1957_v31 = vld [vmem:[%s3486_s2 + $0x98] sm:$0xff] (!%p2285_p6) }
 0x174   : > { %v1326_v48 = vpop.permute.xlu1 %1325  ;;  %v1321_v49 = vpop.permute.xlu0 %1320 }
 0x175   : > { %v1643_v52 = vadd.f32 %v1642_v46, %v1516_v45  ;;  %v1518_v54 = vmul.f32 %v2515_v47, %v1321_v49  ;;  %v1519_v60 = vmul.f32 %v2516_v53, %v1326_v48  ;;  %v2543_v46 = vunpack.c.l.bf16 %v2610_v40  ;;  %v2611_v49 = vld [vmem:[%s2933_s15 + $0x1f8] sm:$0xff]  }
 0x176   : > { %v2548_v59 = vunpack.c.h.bf16 %v2611_v49 }
 0x177   : > { %v1644_v55 = vadd.f32 %v1643_v52, %v1517_v51  ;;  %v2544_v52 = vunpack.c.h.bf16 %v2610_v40 }
 0x178   : > { %v1336_v57 = vpop.permute.xlu1 %1335  ;;  %v1331_v58 = vpop.permute.xlu0 %1330 }
 0x179   : > { %v1645_v61 = vadd.f32 %v1644_v55, %v1518_v54  ;;  %v1520_v63 = vmul.f32 %v2519_v56, %v1331_v58  ;;  %v1521_v5 = vmul.f32 %v2520_v62, %v1336_v57  ;;  %v2547_v55 = vunpack.c.l.bf16 %v2611_v49  ;;  %v2062_v49 = vld [vmem:[%s3488_s4 + $0x18] sm:$0xff] (!%p2285_p6) }
 0x17b   : > { %v1646_v0 = vadd.f32 %v1645_v61, %v1519_v60 }
 0x17c   : > { %v1346_v2 = vpop.permute.xlu1 %1345  ;;  %v1341_v3 = vpop.permute.xlu0 %1340 }
 0x17d   : > { %v1647_v6 = vadd.f32 %v1646_v0, %v1520_v63  ;;  %v1522_v8 = vmul.f32 %v2523_v1, %v1341_v3  ;;  %v1523_v14 = vmul.f32 %v2524_v7, %v1346_v2  ;;  %v767_v1 = vld [vmem:[#allocation2] sm:$0xff]  ;;  %v2857_v7 = vmov (!%p2285_p6), 0  }
 0x17e   : > { %2766 = vset.pattern.permute.xlu0 (!%p2285_p6), %v2857_v7  ;;  %v2066_v7 = vld [vmem:[%s3488_s4 + $0x38] sm:$0xff] (!%p2285_p6) }
 0x17f   : > { %v1648_v9 = vadd.f32 %v1647_v6, %v1521_v5  ;;  %v1939_v5 = vld [vmem:[%s3486_s2 + $0x8] sm:$0xff] (!%p2285_p6)  ;;  %v1941_v6 = vld [vmem:[%s3486_s2 + $0x18] sm:$0xff] (!%p2285_p6) }
 0x180   : > { %v1356_v11 = vpop.permute.xlu1 %1355  ;;  %v1351_v12 = vpop.permute.xlu0 %1350 }
 0x181   : > { %v1649_v15 = vadd.f32 %v1648_v9, %v1522_v8  ;;  %v1524_v17 = vmul.f32 %v2527_v10, %v1351_v12  ;;  %v1525_v23 = vmul.f32 %v2528_v16, %v1356_v11  ;;  %v1929_v8 = vmax.f32 (!%p2285_p6), %v1928_v4, 1.0  ;;  %v1938_v10 = vld [vmem:[%s3486_s2] sm:$0xff] (!%p2285_p6)  ;;  %v1940_v11 = vld [vmem:[%s3486_s2 + $0x10] sm:$0xff] (!%p2285_p6)  ;;  %v1943_v12 = vld [vmem:[%s3486_s2 + $0x28] sm:$0xff] (!%p2285_p6) }
 0x182   : > { %v2664_v9 = vpack.c.bf16 (!%p2285_p6), %v1941_v6, %v1939_v5  ;;  %v2666_v13 = vpack.c.bf16 (!%p2285_p6), %v1940_v11, %v1938_v10  ;;  %v1944_v16 = vld [vmem:[%s3486_s2 + $0x30] sm:$0xff] (!%p2285_p6)  ;;  %v2064_v4 = vld [vmem:[%s3488_s4 + $0x28] sm:$0xff] (!%p2285_p6) }
 0x183   : > { %v1650_v18 = vadd.f32 %v1649_v15, %v1523_v14  ;;  %v1945_v14 = vld [vmem:[%s3486_s2 + $0x38] sm:$0xff] (!%p2285_p6)  ;;  %v1942_v15 = vld [vmem:[%s3486_s2 + $0x20] sm:$0xff] (!%p2285_p6)  ;;  %2767 = vrcp.f32 (!%p2285_p6), %v1929_v8  ;;  %v2065_v6 = vld [vmem:[%s3488_s4 + $0x30] sm:$0xff] (!%p2285_p6) }
 0x184   : > { %v1366_v20 = vpop.permute.xlu1 %1365  ;;  %v1361_v21 = vpop.permute.xlu0 %1360  ;;  %2665 = vmatprep.subr.bf16.mxu0 (!%p2285_p6), %v2664_v9  ;;  %v2706_v8 = vpack.c.bf16 (!%p2285_p6), %v2066_v7, %v2065_v6  ;;  %v2067_v9 = vld [vmem:[%s3488_s4 + $0x40] sm:$0xff] (!%p2285_p6)  ;;  %v2068_v10 = vld [vmem:[%s3488_s4 + $0x48] sm:$0xff] (!%p2285_p6) }
 0x185   : > { %v1651_v24 = vadd.f32 %v1650_v18, %v1524_v17  ;;  %v1526_v26 = vmul.f32 %v2531_v19, %v1361_v21  ;;  %v1527_v32 = vmul.f32 %v2532_v25, %v1366_v20  ;;  %v2668_v17 = vpack.c.bf16 (!%p2285_p6), %v1945_v14, %v1943_v12  ;;  %v1947_v18 = vld [vmem:[%s3486_s2 + $0x48] sm:$0xff] (!%p2285_p6)  ;;  %v1949_v19 = vld [vmem:[%s3486_s2 + $0x58] sm:$0xff] (!%p2285_p6)  ;;  %2667 = vmatpush1.bf16.msra.mxu0 (!%p2285_p6), %v2666_v13  ;;  %v2069_v12 = vld [vmem:[%s3488_s4 + $0x50] sm:$0xff] (!%p2285_p6) }
 0x186   : > { %v2670_v20 = vpack.c.bf16 (!%p2285_p6), %v1944_v16, %v1942_v15  ;;  %v2672_v21 = vpack.c.bf16 (!%p2285_p6), %v1949_v19, %v1947_v18  ;;  %v1953_v25 = vld [vmem:[%s3486_s2 + $0x78] sm:$0xff] (!%p2285_p6)  ;;  %v2709_v11 = vpack.c.bf16 (!%p2285_p6), %v2068_v10, %v2067_v9  ;;  %v2071_v15 = vld [vmem:[%s3488_s4 + $0x60] sm:$0xff] (!%p2285_p6)  ;;  %v2072_v16 = vld [vmem:[%s3488_s4 + $0x68] sm:$0xff] (!%p2285_p6) }
 0x187   : > { %v1652_v27 = vadd.f32 %v1651_v24, %v1525_v23  ;;  %2669 = vmatprep.subr.bf16.mxu0 (!%p2285_p6), %v2668_v17  ;;  %v1948_v23 = vld [vmem:[%s3486_s2 + $0x50] sm:$0xff] (!%p2285_p6)  ;;  %v1951_v24 = vld [vmem:[%s3486_s2 + $0x68] sm:$0xff] (!%p2285_p6)  ;;  %v2070_v13 = vld [vmem:[%s3488_s4 + $0x58] sm:$0xff] (!%p2285_p6)  ;;  %v2715_v17 = vpack.c.bf16 (!%p2285_p6), %v2072_v16, %v2071_v15 }
 0x188   : > { %v1376_v29 = vpop.permute.xlu1 %1375  ;;  %v1371_v30 = vpop.permute.xlu0 %1370  ;;  %v2712_v14 = vpack.c.bf16 (!%p2285_p6), %v2070_v13, %v2069_v12  ;;  %v2073_v18 = vld [vmem:[%s3488_s4 + $0x70] sm:$0xff] (!%p2285_p6)  ;;  %v2074_v19 = vld [vmem:[%s3488_s4 + $0x78] sm:$0xff] (!%p2285_p6) }
 0x189   : > { %v1653_v33 = vadd.f32 %v1652_v27, %v1526_v26  ;;  %v1528_v35 = vmul.f32 %v2535_v28, %v1371_v30  ;;  %v1529_v41 = vmul.f32 %v2536_v34, %v1376_v29  ;;  %2671 = vmatpush1.bf16.msra.mxu0 (!%p2285_p6), %v2670_v20  ;;  %v2674_v26 = vpack.c.bf16 (!%p2285_p6), %v1948_v23, %v1946_v22  ;;  %v1950_v28 = vld [vmem:[%s3486_s2 + $0x60] sm:$0xff] (!%p2285_p6)  ;;  %v1952_v29 = vld [vmem:[%s3486_s2 + $0x70] sm:$0xff] (!%p2285_p6)  ;;  %v1955_v30 = vld [vmem:[%s3486_s2 + $0x88] sm:$0xff] (!%p2285_p6) }
 0x18a   : > { %2673 = vmatprep.subr.bf16.mxu0 (!%p2285_p6), %v2672_v21  ;;  %v2676_v27 = vpack.c.bf16 (!%p2285_p6), %v1953_v25, %v1951_v24  ;;  %v2680_v34 = vpack.c.bf16 (!%p2285_p6), %v1957_v31, %v1955_v30  ;;  %v2718_v20 = vpack.c.bf16 (!%p2285_p6), %v2074_v19, %v2073_v18  ;;  %v1972_v21 = vlaneseq (!%p2285_p6)  ;;  %v1970_v24 = vld [vmem:[%s3487_s3] sm:$0x3] (!%p2285_p6) }
 0x18b   : > { %v1654_v36 = vadd.f32 %v1653_v33, %v1527_v32  ;;  %v2678_v32 = vpack.c.bf16 (!%p2285_p6), %v1952_v29, %v1950_v28 }
 0x18c   : > { %v1386_v38 = vpop.permute.xlu1 %1385  ;;  %v1381_v39 = vpop.permute.xlu0 %1380  ;;  %v1973_v22 = vshrl.u32 (!%p2285_p6), %v1972_v21, 7 }
 0x18d   : > { %v1655_v42 = vadd.f32 %v1654_v36, %v1528_v35  ;;  %v1530_v44 = vmul.f32 %v2539_v37, %v1381_v39  ;;  %v1531_v50 = vmul.f32 %v2540_v43, %v1386_v38  ;;  %2675 = vmatpush1.bf16.msra.mxu0 (!%p2285_p6), %v2674_v26  ;;  %v2768_v33 = vpop.eup (!%p2285_p6), %2767  ;;  %v1954_v35 = vld [vmem:[%s3486_s2 + $0x80] sm:$0xff] (!%p2285_p6)  ;;  %v1956_v36 = vld [vmem:[%s3486_s2 + $0x90] sm:$0xff] (!%p2285_p6)  ;;  %v1959_v37 = vld [vmem:[%s3486_s2 + $0xa8] sm:$0xff] (!%p2285_p6)  ;;  %v2858_v39 = vmov (!%p2285_p6), 0.0  }
 0x18e   : > { %2677 = vmatprep.subr.bf16.mxu0 (!%p2285_p6), %v2676_v27  ;;  %1934 = vperm.xlu0 (!%p2285_p6), %2766, %v2768_v33   ;;  %v1961_v38 = vld [vmem:[%s3486_s2 + $0xb8] sm:$0xff] (!%p2285_p6)  ;;  %v2682_v40 = vpack.c.bf16 (!%p2285_p6), %v1956_v36, %v1954_v35  ;;  %v2061_v43 = vld [vmem:[%s3488_s4 + $0x10] sm:$0xff] (!%p2285_p6)  ;;  %v1974_v23 = vsub.s32 (!%p2285_p6), 0, %v1973_v22  ;;  %v1978_v25 = vsub.s32 (!%p2285_p6), 1, %v1973_v22 }
 0x18f   : > { %v1656_v45 = vadd.f32 %v1655_v42, %v1529_v41  ;;  %2046 = vmatprep.mubr.f32.mxu0 (!%p2285_p6), %v2858_v39  ;;  %v2059_v41 = vld [vmem:[%s3488_s4] sm:$0xff] (!%p2285_p6)  ;;  %v2060_v42 = vld [vmem:[%s3488_s4 + $0x8] sm:$0xff] (!%p2285_p6)  ;;  %2661 = vmatprep.mubr.msk.f32.mxu1 (!%p2285_p6), %vm2860_vm2, %v2858_v39 }
 0x190   : > { %v1396_v47 = vpop.permute.xlu1 %1395  ;;  %v1391_v48 = vpop.permute.xlu0 %1390  ;;  %v1975_v26 = vrot.slane (!%p2285_p6), %v1970_v24, %v1974_v23  ;;  %v1979_v27 = vrot.slane (!%p2285_p6), %v1970_v24, %v1978_v25 }
 0x191   : > { %v1657_v51 = vadd.f32 %v1656_v45, %v1530_v44  ;;  %v1532_v53 = vmul.f32 %v2543_v46, %v1391_v48  ;;  %v1533_v57 = vmul.f32 %v2544_v52, %v1396_v47  ;;  %2679 = vmatpush1.bf16.msra.mxu0 (!%p2285_p6), %v2678_v32  ;;  %v2684_v44 = vpack.c.bf16 (!%p2285_p6), %v1961_v38, %v1959_v37  ;;  %v1958_v45 = vld [vmem:[%s3486_s2 + $0xa0] sm:$0xff] (!%p2285_p6)  ;;  %v1960_v46 = vld [vmem:[%s3486_s2 + $0xb0] sm:$0xff] (!%p2285_p6) }
 0x192   : > { %2681 = vmatprep.subr.bf16.mxu0 (!%p2285_p6), %v2680_v34  ;;  %v2859_v47 = vmov (!%p2285_p6), 0.0|0.0   ;;  %v2697_v48 = vpack.c.bf16 (!%p2285_p6), %v2060_v42, %v2059_v41  ;;  %v2700_v52 = vpack.c.bf16 (!%p2285_p6), %v2062_v49, %v2061_v43  ;;  %v2053_v34 = vld [vmem:[%s3490_s6] sm:$0xff] (!%p2285_p6) }
 0x193   : > { %v1658_v54 = vadd.f32 %v1657_v51, %v1531_v50  ;;  %2696 = vmatprep.subr.bf16.mxu1 (!%p2285_p6), %v2859_v47  ;;  %v1963_v50 = vld [vmem:[%s3486_s2 + $0xc8] sm:$0xff] (!%p2285_p6)  ;;  %v1965_v51 = vld [vmem:[%s3486_s2 + $0xd8] sm:$0xff] (!%p2285_p6)  ;;  %v2286_v38 = vld [vmem:[%s3489_s5] ss:$0 sm:$0xff] (!%p2285_p6) }
 0x194   : > { %v1401_v56 = vpop.permute.xlu0 %1400  ;;  %v1406_v60 = vpop.permute.xlu1 %1405  ;;  %2698 = vmatpush3.bf16.msra.mxu1 (!%p2285_p6), %v2697_v48 }
 0x195   : > { %v1659_v58 = vadd.f32 %v1658_v54, %v1532_v53  ;;  %v1534_v61 = vmul.f32 %v2547_v55, %v1401_v56  ;;  %v1535_v63 = vmul.f32 %v2548_v59, %v1406_v60  ;;  %2683 = vmatpush1.bf16.msra.mxu0 (!%p2285_p6), %v2682_v40  ;;  %v2686_v53 = vpack.c.bf16 (!%p2285_p6), %v1960_v46, %v1958_v45  ;;  %v1962_v55 = vld [vmem:[%s3486_s2 + $0xc0] sm:$0xff] (!%p2285_p6)  ;;  %v1964_v56 = vld [vmem:[%s3486_s2 + $0xd0] sm:$0xff] (!%p2285_p6) }
 0x196   : > { %2699 = vmatprep.subr.bf16.mxu1 (!%p2285_p6), %v2859_v47  ;;  %2685 = vmatprep.subr.bf16.mxu0 (!%p2285_p6), %v2684_v44  ;;  %v2688_v54 = vpack.c.bf16 (!%p2285_p6), %v1965_v51, %v1963_v50  ;;  %v2690_v59 = vpack.c.bf16 (!%p2285_p6), %v1964_v56, %v1962_v55 }
 0x197   : > { %v1660_v62 = vadd.f32 %v1659_v58, %v1533_v57  ;;  %v1967_v57 = vld [vmem:[%s3486_s2 + $0xe8] sm:$0xff] (!%p2285_p6)  ;;  %v1969_v58 = vld [vmem:[%s3486_s2 + $0xf8] sm:$0xff] (!%p2285_p6) }
 0x198   : > { %2701 = vmatpush3.bf16.msra.mxu1 (!%p2285_p6), %v2700_v52  ;;  %v2692_v60 = vpack.c.bf16 (!%p2285_p6), %v1969_v58, %v1967_v57 }
 0x199   : > { %v1661_v0 = vadd.f32 %v1660_v62, %v1534_v61  ;;  %1927 = sbr.rel (%p2285_p6) target bundleno = 977 (0x3d1), region = 56  ;;  %2687 = vmatpush1.bf16.msra.mxu0 (!%p2285_p6), %v2686_v53  ;;  %2702 = vmatprep.subr.bf16.mxu1 (!%p2285_p6), %v2859_v47  ;;  %v1966_v61 = vld [vmem:[%s3486_s2 + $0xe0] sm:$0xff] (!%p2285_p6)  ;;  %v1968_v62 = vld [vmem:[%s3486_s2 + $0xf0] sm:$0xff] (!%p2285_p6) }
 0x19a   : > { %2689 = vmatprep.subr.bf16.mxu0 (!%p2285_p6), %v2688_v54 }
 0x19b   : > { %v1662_v2 = vadd.f32 %v1661_v0, %v1535_v63  ;;  %v2694_v63 = vpack.c.bf16 (!%p2285_p6), %v1968_v62, %v1966_v61 }
 0x19d   : > { %v1663_v3 = vadd.f32 %v1662_v2, %v767_v1  ;;  %2691 = vmatpush1.bf16.msra.mxu0 (!%p2285_p6), %v2690_v59 }
 0x19e   : > { %2693 = vmatprep.subr.bf16.mxu0 (!%p2285_p6), %v2692_v60 }
 0x19f   : > { %1664 = vst [vmem:[#allocation2] sm:$0xff] %v1663_v3  ;;  %v2063_v3 = vld [vmem:[%s3488_s4 + $0x20] sm:$0xff] (!%p2285_p6) }
 0x1a0   : > { %v2703_v5 = vpack.c.bf16 %v2064_v4, %v2063_v3 }
 0x1a1   : > { %2695 = vmatpush1.bf16.msra.mxu0 %v2694_v63 }
 0x1a2   : > { %2704 = vmatpush3.bf16.msra.mxu1 %v2703_v5 }
 0x1a3   : > { %2705 = vmatprep.subr.bf16.mxu1 %v2859_v47 }
 0x1a6   : > { %v1930_v0 = vld [vmem:[#allocation2] sm:$0xff]  ;;  %2707 = vmatpush3.bf16.msra.mxu1 %v2706_v8 }
 0x1a7   : > { %2708 = vmatprep.subr.bf16.mxu1 %v2859_v47 }
 0x1aa   : > { %2710 = vmatpush3.bf16.msra.mxu1 %v2709_v11 }
 0x1ab   : > { %2711 = vmatprep.subr.bf16.mxu1 %v2859_v47 }
 0x1ae   : > { %2713 = vmatpush3.bf16.msra.mxu1 %v2712_v14 }
 0x1af   : > { %2714 = vmatprep.subr.bf16.mxu1 %v2859_v47 }
 0x1b2   : > { %2716 = vmatpush3.bf16.msra.mxu1 %v2715_v17 }
 0x1b3   : > { %2717 = vmatprep.subr.bf16.mxu1 %v2859_v47 }
 0x1b6   : > { %2719 = vmatpush3.bf16.msra.mxu1 %v2718_v20 }
 0x20d   : > { %v1935_v1 = vpop.permute.xlu0 %1934 }
 0x20e   : > { %v1937_v2 = vmul.f32 %v1935_v1, %v1930_v0 }
 0x210   : > { %2047 = vmatmul.mubr.f32.vlgmr.msra.gmra.mrb[0].mxu0 %v1937_v2 }
 0x2e3   : > { %v2048_v28 = vpop.f32.mrb[0].mxu0 }
 0x2e4   : > { %v2049_v29 = vadd.f32 %v2048_v28, %v1975_v26  ;;  %v2050_v30 = vpop.f32.mrb[1].mxu0 }
 0x2e5   : > { %v2051_v31 = vadd.f32 %v2050_v30, %v1979_v27 }
 0x2e6   : > { %2152 = vst [vmem:[#allocation4] sm:$0xff] %v2049_v29 }
 0x2e7   : > { %v2054_v32 = vmul.f32 0.5, %v2051_v31  ;;  %2153 = vst [vmem:[#allocation4 + $0x8] sm:$0xff] %v2051_v31 }
 0x2e9   : > { %v2055_v33 = vmul.f32 1.442695, %v2054_v32 }
 0x2eb   : > { %2769 = vpow2.f32 %v2055_v33 }
 0x2f5   : > { %v2770_v35 = vpop.eup %2769 }
 0x2f6   : > { %v2057_v36 = vmul.f32 %v2770_v35, %v2053_v34 }
 0x2f8   : > { %v2058_v37 = vadd.f32 %v2057_v36, %v2049_v29 }
 0x2fa   : > { %2662 = vmatmul.mubr.f32.vlgmr.msra.gmra.mrb[0].mxu1 %v2058_v37  ;;  %2154 = vst [vmem:[#allocation4 + $0x10] sm:$0xff] %v2058_v37 }
 0x3cd   : > { %v2148_v39 = vpop.f32.mrb[0].mxu1 }
 0x3ce   : > { %v2149_v40 = vadd.f32 %v2286_v38, %v2148_v39  ;;  %v2663_v41 = vpop.f32.mrb[1].mxu1 }
 0x3d0   : > { %2155 = vst [vmem:[#allocation6] sm:$0xff] %v2149_v40 }
 0x3d1 PF: > { %p3420_p7 = scmp.eq.s32.totalorder %s2275_s30, 1  ;;  %s2861_s14 = smov [#allocation4]  }
 0x3d2   : > { %s2166_s15 = sshll.u32 %s2861_s14, 4  ;;  %s2862_s16 = smov [#allocation6]   ;;  %s2167_s15 = int_to_ptr.vmem [resolvable:$true] %s2166_s15 }
 0x3d3   : > { %s2179_s17 = sshll.u32 %s2862_s16, 4  ;;  %s2771_s18 = scalar_lea.vmem %s2167_s15, 384  ;;  %s3424_s17 = int_to_ptr.vmem [resolvable:$true] %s2179_s17 }
 0x3d4   : > { %p2772_p8 = scmp.ne.s32.totalorder %s2167_s15, %s2771_s18  ;;  %p2778_p11 = scmp.lt.s32.totalorder %s2167_s15, %s2167_s15 }
 0x3d5   : > { %p2779_p12 = scmp.lt.s32.totalorder %s2771_s18, %s2771_s18 }
 0x3d6   : > { %p2773_p9 = pnand %p2772_p8, %p3420_p7 }
 0x3d7   : > { %p2780_p13 = por %p2779_p12, %p2778_p11 }
 0x3d8   : > { %p2774_p10 = pneg %p2773_p9 }
 0x3da   : > { %p2781_p0 = pnand %p2780_p13, %p2774_p10 }
 0x3dc   : > { %2784 = shalt.err (!%p2781_p0)
}
 0x3dd   : > { %s2785_s20 = scalar_lea.hbm %s3491_s7, 384 }
 0x3de   : > { %p2786_p1 = scmp.ne.s32.totalorder %s3491_s7, %s2785_s20  ;;  %p2791_p4 = scmp.lt.u32.totalorder %s2785_s20, %s3491_s7 }
 0x3e0   : > { %p2787_p2 = pnand %p2786_p1, %p3420_p7 }
 0x3e2   : > { %p2788_p3 = pneg %p2787_p2 }
 0x3e4   : > { %p2793_p5 = pnand %p2791_p4, %p2788_p3 }
 0x3e6   : > { %2796 = shalt.err (!%p2793_p5)
}
 0x3e7   : > { %2721 = dma.vmem_to_hbm [thread:$0]  (%p3420_p7), %s2167_s15, 384, %s3491_s7, [#allocation5]  }
 0x3e8   : > { %s2797_s27 = scalar_lea.vmem %s3424_s17, 128  ;;  %p2804_p10 = scmp.lt.s32.totalorder %s3424_s17, %s3424_s17 }
 0x3e9   : > { %p2798_p6 = scmp.ne.s32.totalorder %s3424_s17, %s2797_s27  ;;  %p2805_p11 = scmp.lt.s32.totalorder %s2797_s27, %s2797_s27 }
 0x3eb   : > { %p2799_p8 = pnand %p2798_p6, %p3420_p7  ;;  %p2806_p12 = por %p2805_p11, %p2804_p10 }
 0x3ed   : > { %p2800_p9 = pneg %p2799_p8 }
 0x3ef   : > { %p2807_p13 = pnand %p2806_p12, %p2800_p9 }
 0x3f1   : > { %2810 = shalt.err (!%p2807_p13)
}
 0x3f2   : > { %s2811_s12 = scalar_lea.hbm %s3492_s8, 128 }
 0x3f3   : > { %p2812_p0 = scmp.ne.s32.totalorder %s3492_s8, %s2811_s12  ;;  %p2817_p3 = scmp.lt.u32.totalorder %s2811_s12, %s3492_s8 }
 0x3f5   : > { %p2813_p1 = pnand %p2812_p0, %p3420_p7 }
 0x3f7   : > { %p2814_p2 = pneg %p2813_p1 }
 0x3f9   : > { %p2819_p4 = pnand %p2817_p3, %p2814_p2 }
 0x3fb   : > { %2822 = shalt.err (!%p2819_p4)
}
 0x3fc   : > { %2723 = dma.vmem_to_hbm [thread:$0]  (%p3420_p7), %s3424_s17, 128, %s3492_s8, [#allocation7]  }
 0x3fd   : > { %2836 = dma.done.wait (%p3420_p7), [#allocation5], 384  }
 0x3fe   : > { %2838 = vsyncadd (%p3420_p7), [#allocation5], 4294966912 }
 0x3ff   : > { %2840 = dma.done.wait (%p3420_p7), [#allocation7], 128  }
 0x400   : > { %2842 = vsyncadd (%p3420_p7), [#allocation7], 4294967168 }
 0x401 PF: > { %s21_s29 = sadd.s32 1, %s2853_s29   ;;  %s3494_s27 = smov %s2849_s28 }
 0x402   : > { %p18_p5 = scmp.ge.s32.totalorder %s21_s29, 4   ;;  %s3495_s28 = smov %s3497_s9 }
 0x404   :  { %20 = sbr.rel (!%p18_p5) target bundleno = 3 (0x3), region = 99 }
 0x40b   :  { %2196 = vsyncpa [#allocation5], 1 }
 0x40c   :  { %2198 = vsyncpa [#allocation5 + $0x1], 1 }
 0x40d   :  { %2199 = vsyncpa [#allocation7], 1 }

</bundles_post_ra>
